<compile_context>
chip_gen: v7x
topology: tpu7x:2x2x1
jax: 0.10.0
libtpu: 0.0.40
codegen_flags: <defaults>
</compile_context>

<pallas_src>
import functools

import numpy as np
import jax
import jax.numpy as jnp
from jax.experimental import pallas as pl
from jax.experimental.pallas import tpu as pltpu

H = 23                  # true hidden size == input channels
HP = 32                 # padded per-direction hidden size (lane aligned)
DH = 2 * HP             # 64  : [fwd | bwd] hidden lanes
DG = 8 * HP             # 256 : combined gate lanes [i_f i_b | f_f f_b | o_f o_b | g_f g_b]
NUM_LAYERS = 2
NUM_DIRS = 2

_VMEM = pl.BlockSpec(memory_space=pltpu.MemorySpace.VMEM)
_GATE_ORDER = (0, 1, 3, 2)   # kernel gates [i, f, o, g] <- torch row-block [i, f, g, o]


# ----------------------------------------------------------------------------
# Fused Pallas kernel: 2 BiLSTM layers + FC, everything resident in VMEM.
# ----------------------------------------------------------------------------
def _bi_lstm_fused_kernel(xp_ref, wih0_ref, whh0_ref, b0_ref,
                          wih1_ref, whh1_ref, b1_ref, wfc_ref, bfc_ref,
                          out_ref, hn_ref,
                          proj_ref, seq0_ref, seq1_ref, *, seq_len, batch):
    T, B = seq_len, batch

    def run_layer(whh_ref, store_h):
        # ONE block-diagonal recurrent matmul per step covers BOTH directions:
        # h is (B, DH) = [h_fwd | h_bwd]; whh is (DH, DG) block-diagonal per gate,
        # so the single (B,64)x(64,256) dot is the only MXU op on the serial chain.
        whh = whh_ref[...]                                    # hoisted, loop-invariant
        h = jnp.zeros((B, DH), jnp.float32)
        c = jnp.zeros((B, DH), jnp.float32)
        # TODO(synk): optionally cast h/whh to bf16 on v6e/v7x (keep f32 accumulate).
        for step in range(T):                                 # static unroll (T small)
            gates = (proj_ref[pl.ds(step * B, B), :] +
                     jnp.dot(h, whh, preferred_element_type=jnp.float32))
            # Full-vreg nonlinearities, slice afterwards (no masked pre-slice temps).
            sig = jax.nn.sigmoid(gates)
            tnh = jnp.tanh(gates)
            i_g = sig[:, 0 * DH:1 * DH]
            f_g = sig[:, 1 * DH:2 * DH]
            o_g = sig[:, 2 * DH:3 * DH]
            g_g = tnh[:, 3 * DH:4 * DH]
            c = f_g * c + i_g * g_g
            h = o_g * jnp.tanh(c)
            store_h(step, h)
        return h

    # ------------------------------ layer 0 ------------------------------
    # Hoisted input projection for all T steps and both directions (one matmul),
    # written straight to VMEM scratch so the (T*B, DG) slab is never register-live.
    proj_ref[...] = (jnp.dot(xp_ref[...], wih0_ref[...],
                             preferred_element_type=jnp.float32) + b0_ref[...])

    def store_l0(step, h):
        tf, tb = step, T - 1 - step
        hf, hb = h[:, :HP], h[:, HP:]
        # natural-time half (feeds layer-1 fwd direction)
        seq0_ref[tf * B:(tf + 1) * B, 0 * HP:1 * HP] = hf
        seq0_ref[tb * B:(tb + 1) * B, 1 * HP:2 * HP] = hb
        # time-reversed mirror (feeds layer-1 bwd direction)
        seq0_ref[tb * B:(tb + 1) * B, 2 * HP:3 * HP] = hf
        seq0_ref[tf * B:(tf + 1) * B, 3 * HP:4 * HP] = hb

    h_l0 = run_layer(whh0_ref, store_l0)
    hn_ref[0] = h_l0        # store immediately: bounds live range across layer 1

    # ------------------------------ layer 1 ------------------------------
    # seq0 row block t = [h_fwd(t) | h_bwd(t) | h_fwd(T-1-t) | h_bwd(T-1-t)], so a
    # SINGLE matmul produces the per-step gate inputs for both directions.
    proj_ref[...] = (jnp.dot(seq0_ref[...], wih1_ref[...],
                             preferred_element_type=jnp.float32) + b1_ref[...])

    def store_l1(step, h):
        tf, tb = step, T - 1 - step
        seq1_ref[tf * B:(tf + 1) * B, 0:HP] = h[:, :HP]
        seq1_ref[tb * B:(tb + 1) * B, HP:DH] = h[:, HP:]

    h_l1 = run_layer(whh1_ref, store_l1)
    hn_ref[1] = h_l1

    # --------------- final Linear(46 -> 23) over the whole sequence ---------------
    out_ref[...] = (jnp.dot(seq1_ref[...], wfc_ref[...],
                            preferred_element_type=jnp.float32) + bfc_ref[...])


# ----------------------------------------------------------------------------
# One-time host-side weight packing (numpy; kept OUT of the per-call jit path).
# ----------------------------------------------------------------------------
def _gate_cols(w, d):
    """(4H, Din) torch weight, direction d -> (Din, DG) in kernel gate layout."""
    wt = np.asarray(w, np.float32).T                     # (Din, 4H)
    out = np.zeros((wt.shape[0], DG), np.float32)
    for k, tg in enumerate(_GATE_ORDER):
        c0 = k * DH + d * HP
        out[:, c0:c0 + H] = wt[:, tg * H:(tg + 1) * H]
    return out


def _gate_bias(b_ih, b_hh, d):
    b = np.asarray(b_ih, np.float32) + np.asarray(b_hh, np.float32)
    out = np.zeros((DG,), np.float32)
    for k, tg in enumerate(_GATE_ORDER):
        c0 = k * DH + d * HP
        out[c0:c0 + H] = b[tg * H:(tg + 1) * H]
    return out


def pack_weights(params):
    # layer 0: x_pair rows map lanes [0:HP]=x(t), [HP:DH]=x(T-1-t)
    wih0 = np.zeros((DH, DG), np.float32)
    wih0[0:H, :] = _gate_cols(params["w_ih_l0_d0"], 0)
    wih0[HP:HP + H, :] = _gate_cols(params["w_ih_l0_d1"], 1)

    whh0 = np.zeros((DH, DG), np.float32)               # block-diagonal per gate
    whh0[0:H, :] = _gate_cols(params["w_hh_l0_d0"], 0)
    whh0[HP:HP + H, :] = _gate_cols(params["w_hh_l0_d1"], 1)

    b0 = (_gate_bias(params["b_ih_l0_d0"], params["b_hh_l0_d0"], 0)
          + _gate_bias(params["b_ih_l0_d1"], params["b_hh_l0_d1"], 1)).reshape(1, DG)

    # layer 1: seq0 lanes [0:DH]=natural-time [h_fwd|h_bwd], [DH:2DH]=time-reversed
    wih1 = np.zeros((2 * DH, DG), np.float32)
    pk = _gate_cols(params["w_ih_l1_d0"], 0)             # rows: [fwd feats | bwd feats]
    wih1[0:H, :] = pk[0:H, :]
    wih1[HP:HP + H, :] = pk[H:2 * H, :]
    pk = _gate_cols(params["w_ih_l1_d1"], 1)
    wih1[DH:DH + H, :] = pk[0:H, :]
    wih1[DH + HP:DH + HP + H, :] = pk[H:2 * H, :]

    whh1 = np.zeros((DH, DG), np.float32)
    whh1[0:H, :] = _gate_cols(params["w_hh_l1_d0"], 0)
    whh1[HP:HP + H, :] = _gate_cols(params["w_hh_l1_d1"], 1)

    b1 = (_gate_bias(params["b_ih_l1_d0"], params["b_hh_l1_d0"], 0)
          + _gate_bias(params["b_ih_l1_d1"], params["b_hh_l1_d1"], 1)).reshape(1, DG)

    # final Linear(2H -> H)
    fwT = np.asarray(params["fc_w"], np.float32).T        # (2H, H)
    wfc = np.zeros((DH, HP), np.float32)
    wfc[0:H, 0:H] = fwT[0:H]
    wfc[HP:HP + H, 0:H] = fwT[H:2 * H]
    bfc = np.zeros((1, HP), np.float32)
    bfc[0, :H] = np.asarray(params["fc_b"], np.float32)

    # Padded gate columns MUST stay exactly zero (see padding invariant above).
    for m in (wih0, whh0, b0, wih1, whh1, b1):
        for k in range(4):
            for d in range(2):
                c0 = k * DH + d * HP
                assert not m[..., c0 + H:c0 + HP].any()

    packed = (wih0, whh0, b0, wih1, whh1, b1, wfc, bfc)
    return tuple(jnp.asarray(a) for a in packed)


# ----------------------------------------------------------------------------
# Parameter init (deterministic, mimics PyTorch U(-1/sqrt(H), 1/sqrt(H)))
# ----------------------------------------------------------------------------
def init_params(key):
    params = {}
    keys = iter(jax.random.split(key, 4 * NUM_LAYERS * NUM_DIRS + 2))

    def u(shape, bound):
        return jax.random.uniform(next(keys), shape, jnp.float32, -bound, bound)

    k = 1.0 / float(np.sqrt(H))
    for layer in range(NUM_LAYERS):
        din = H if layer == 0 else 2 * H
        for d in range(NUM_DIRS):
            params[f"w_ih_l{layer}_d{d}"] = u((4 * H, din), k)
            params[f"w_hh_l{layer}_d{d}"] = u((4 * H, H), k)
            params[f"b_ih_l{layer}_d{d}"] = u((4 * H,), k)
            params[f"b_hh_l{layer}_d{d}"] = u((4 * H,), k)
    kf = 1.0 / float(np.sqrt(2 * H))
    params["fc_w"] = u((H, 2 * H), kf)
    params["fc_b"] = u((H,), kf)
    return params


# ----------------------------------------------------------------------------
# Full forward pass (== bi_lstm.forward), one pallas_call total.
# ----------------------------------------------------------------------------
def bi_lstm_forward(packed, x):
    # x: (B, 23, T) -- the tensor PyTorch receives before x.permute(0, 2, 1)
    wih0, whh0, b0, wih1, whh1, b1, wfc, bfc = packed
    B, C, T = x.shape
    assert C == H

    # time-major, lane-padded, paired with its time-reverse:
    # row block t = [x(t) | x(T-1-t)], each channel block padded H -> HP.
    x_tm = jnp.transpose(x, (2, 0, 1)).astype(jnp.float32)             # (T, B, H)
    x_pad = jnp.zeros((T, B, HP), jnp.float32).at[..., :H].set(x_tm)
    x_pair = jnp.concatenate([x_pad, x_pad[::-1]], axis=-1).reshape(T * B, DH)

    kernel = functools.partial(_bi_lstm_fused_kernel, seq_len=T, batch=B)
    out_flat, hn_pack = pl.pallas_call(
        kernel,
        out_shape=(jax.ShapeDtypeStruct((T * B, HP), jnp.float32),
                   jax.ShapeDtypeStruct((NUM_LAYERS, B, DH), jnp.float32)),
        in_specs=[_VMEM] * 9,
        out_specs=(_VMEM, _VMEM),
        scratch_shapes=[
            pltpu.VMEM((T * B, DG), jnp.float32),      # gate projections (reused per layer)
            pltpu.VMEM((T * B, 2 * DH), jnp.float32),  # layer-0 outputs: natural + reversed
            pltpu.VMEM((T * B, DH), jnp.float32),      # layer-1 outputs: natural order
        ],
    )(x_pair, wih0, whh0, b0, wih1, whh1, b1, wfc, bfc)

    output = out_flat.reshape(T, B, HP)[:, :, :H].transpose(1, 0, 2)          # (B, T, 23)
    hn = jnp.stack([hn_pack[0, :, :H], hn_pack[0, :, HP:HP + H],
                    hn_pack[1, :, :H], hn_pack[1, :, HP:HP + H]], axis=1)     # (B, 4, 23)
    # TODO(synk): `eeg_elmo = cat(hn[-2], hn[-1])` in the original is computed but
    # never used/returned, so it is intentionally omitted here.
    # TODO(synk): on v7x the two directional chains could be split across the two
    # TensorCores via pl.core_map, but that trades away the fused block-diagonal
    # recurrent matmul; benchmark both variants if targeting v7x.
    return output, hn


# ----------------------------------------------------------------------------
# Pure-JAX reference (loose correctness check; TPU matmuls use bf16 passes).
# ----------------------------------------------------------------------------
def _ref_forward(params, x):
    xs = jnp.transpose(x, (2, 0, 1)).astype(jnp.float32)   # (T, B, H)

    def one_dir(inp, wih, whh, bih, bhh, reverse):
        Tn, Bn = inp.shape[0], inp.shape[1]
        h = jnp.zeros((Bn, H), jnp.float32)
        c = jnp.zeros((Bn, H), jnp.float32)
        outs = [None] * Tn
        order = range(Tn - 1, -1, -1) if reverse else range(Tn)
        for t in order:
            z = inp[t] @ wih.T + h @ whh.T + bih + bhh
            i = jax.nn.sigmoid(z[:, 0:H])
            f = jax.nn.sigmoid(z[:, H:2 * H])
            g = jnp.tanh(z[:, 2 * H:3 * H])
            o = jax.nn.sigmoid(z[:, 3 * H:4 * H])
            c = f * c + i * g
            h = o * jnp.tanh(c)
            outs[t] = h
        return jnp.stack(outs, axis=0), h

    inp, hns = xs, []
    for layer in range(NUM_LAYERS):
        of, hf = one_dir(inp, params[f"w_ih_l{layer}_d0"], params[f"w_hh_l{layer}_d0"],
                         params[f"b_ih_l{layer}_d0"], params[f"b_hh_l{layer}_d0"], False)
        ob, hb = one_dir(inp, params[f"w_ih_l{layer}_d1"], params[f"w_hh_l{layer}_d1"],
                         params[f"b_ih_l{layer}_d1"], params[f"b_hh_l{layer}_d1"], True)
        inp = jnp.concatenate([of, ob], axis=-1)
        hns += [hf, hb]
    out = inp @ params["fc_w"].T + params["fc_b"]
    return jnp.transpose(out, (1, 0, 2)), jnp.stack(hns, axis=0).transpose(1, 0, 2)


if __name__ == "__main__":
    key = jax.random.PRNGKey(0)
    pkey, xkey = jax.random.split(key)
    params = init_params(pkey)
    packed = pack_weights(params)          # one-time packing, outside the jit path

    B, C, T = 8, 23, 8                     # batch=8 is hard-coded by h0/c0 in the module
    x = jax.random.normal(xkey, (B, C, T), dtype=jnp.float32)

    fwd = jax.jit(bi_lstm_forward)
    output, hn = fwd(packed, x)
    jax.block_until_ready((output, hn))

    assert output.shape == (B, T, H), output.shape
    assert hn.shape == (B, NUM_LAYERS * NUM_DIRS, H), hn.shape
    assert bool(jnp.all(jnp.isfinite(output))) and bool(jnp.all(jnp.isfinite(hn)))

    # Loose numerical check vs pure-JAX reference (no bit-match: bf16 MXU passes).
    ref_out, ref_hn = jax.jit(_ref_forward)(params, x)
    assert float(jnp.max(jnp.abs(output - ref_out))) < 1e-1
    assert float(jnp.max(jnp.abs(hn - ref_hn))) < 1e-1

    print("KERNEL_OK")
</pallas_src>

<mosaic_0001>
module attributes {stable_mosaic.version = 11 : i64} {
  func.func @_bi_lstm_fused_kernel(%arg0: memref<64x64xf32, #tpu.memory_space<vmem>>, %arg1: memref<64x256xf32, #tpu.memory_space<vmem>>, %arg2: memref<64x256xf32, #tpu.memory_space<vmem>>, %arg3: memref<1x256xf32, #tpu.memory_space<vmem>>, %arg4: memref<128x256xf32, #tpu.memory_space<vmem>>, %arg5: memref<64x256xf32, #tpu.memory_space<vmem>>, %arg6: memref<1x256xf32, #tpu.memory_space<vmem>>, %arg7: memref<64x32xf32, #tpu.memory_space<vmem>>, %arg8: memref<1x32xf32, #tpu.memory_space<vmem>>, %arg9: memref<64x32xf32, #tpu.memory_space<vmem>>, %arg10: memref<2x8x64xf32, #tpu.memory_space<vmem>>, %arg11: memref<64x256xf32, #tpu.memory_space<vmem>>, %arg12: memref<64x128xf32, #tpu.memory_space<vmem>>, %arg13: memref<64x64xf32, #tpu.memory_space<vmem>>) attributes {dimension_semantics = [], scalar_prefetch = 0 : i64, scratch_operands = 3 : i64, tpu.core_type = #tpu.core_type<tc>} {
    %c0 = arith.constant 0 : index
    %c0_0 = arith.constant 0 : index
    %0 = vector.load %arg0[%c0, %c0_0] : memref<64x64xf32, #tpu.memory_space<vmem>>, vector<64x64xf32>
    %c0_1 = arith.constant 0 : index
    %c0_2 = arith.constant 0 : index
    %1 = vector.load %arg1[%c0_1, %c0_2] : memref<64x256xf32, #tpu.memory_space<vmem>>, vector<64x256xf32>
    %cst = arith.constant dense<0.000000e+00> : vector<64x256xf32>
    %2 = tpu.matmul %0, %1, %cst {dimension_numbers = #tpu.dot_dimension_numbers<[1], [0], [0], [1], [0, 0, 1, 1], [], []>} : vector<64x64xf32>, vector<64x256xf32>, vector<64x256xf32> -> vector<64x256xf32>
    %c0_3 = arith.constant 0 : index
    %c0_4 = arith.constant 0 : index
    %3 = vector.load %arg3[%c0_3, %c0_4] : memref<1x256xf32, #tpu.memory_space<vmem>>, vector<1x256xf32>
    %4 = vector.broadcast %3 : vector<1x256xf32> to vector<64x256xf32>
    %5 = arith.addf %2, %4 : vector<64x256xf32>
    %c0_5 = arith.constant 0 : index
    %c0_6 = arith.constant 0 : index
    %6 = vector.load %arg11[%c0_5, %c0_6] : memref<64x256xf32, #tpu.memory_space<vmem>>, vector<64x256xf32>
    tpu.vector_store %arg11[%c0_5, %c0_6], %5 {strides = array<i32>} : memref<64x256xf32, #tpu.memory_space<vmem>>, vector<64x256xf32>,
    %c0_7 = arith.constant 0 : index
    %c0_8 = arith.constant 0 : index
    %7 = vector.load %arg2[%c0_7, %c0_8] : memref<64x256xf32, #tpu.memory_space<vmem>>, vector<64x256xf32>
    %cst_9 = arith.constant 0.000000e+00 : f32
    %8 = vector.broadcast %cst_9 : f32 to vector<8x64xf32>
    %cst_10 = arith.constant 0.000000e+00 : f32
    %9 = vector.broadcast %cst_10 : f32 to vector<8x64xf32>
    %c0_11 = arith.constant 0 : index
    %c0_12 = arith.constant 0 : index
    %10 = vector.load %arg11[%c0_11, %c0_12] : memref<64x256xf32, #tpu.memory_space<vmem>>, vector<8x256xf32>
    %cst_13 = arith.constant dense<0.000000e+00> : vector<8x256xf32>
    %11 = tpu.matmul %8, %7, %cst_13 {dimension_numbers = #tpu.dot_dimension_numbers<[1], [0], [0], [1], [0, 0, 1, 1], [], []>} : vector<8x64xf32>, vector<64x256xf32>, vector<8x256xf32> -> vector<8x256xf32>
    %12 = arith.addf %10, %11 : vector<8x256xf32>
    %13 = arith.negf %12 : vector<8x256xf32>
    %14 = math.exp %13 : vector<8x256xf32>
    %cst_14 = arith.constant 1.000000e+00 : f32
    %15 = vector.broadcast %cst_14 : f32 to vector<8x256xf32>
    %16 = arith.addf %15, %14 : vector<8x256xf32>
    %17 = arith.divf %15, %16 : vector<8x256xf32>
    %18 = math.tanh %12 : vector<8x256xf32>
    %19 = vector.extract_strided_slice %17 {offsets = [0, 0], sizes = [8, 64], strides = [1, 1]} : vector<8x256xf32> to vector<8x64xf32>
    %20 = vector.extract_strided_slice %17 {offsets = [0, 64], sizes = [8, 64], strides = [1, 1]} : vector<8x256xf32> to vector<8x64xf32>
    %21 = vector.extract_strided_slice %17 {offsets = [0, 128], sizes = [8, 64], strides = [1, 1]} : vector<8x256xf32> to vector<8x64xf32>
    %22 = vector.extract_strided_slice %18 {offsets = [0, 192], sizes = [8, 64], strides = [1, 1]} : vector<8x256xf32> to vector<8x64xf32>
    %23 = arith.mulf %20, %9 : vector<8x64xf32>
    %24 = arith.mulf %19, %22 : vector<8x64xf32>
    %25 = arith.addf %23, %24 : vector<8x64xf32>
    %26 = math.tanh %25 : vector<8x64xf32>
    %27 = arith.mulf %21, %26 : vector<8x64xf32>
    %28 = vector.extract_strided_slice %27 {offsets = [0, 0], sizes = [8, 32], strides = [1, 1]} : vector<8x64xf32> to vector<8x32xf32>
    %29 = vector.extract_strided_slice %27 {offsets = [0, 32], sizes = [8, 32], strides = [1, 1]} : vector<8x64xf32> to vector<8x32xf32>
    %c0_15 = arith.constant 0 : index
    %c0_16 = arith.constant 0 : index
    %30 = vector.load %arg12[%c0_15, %c0_16] : memref<64x128xf32, #tpu.memory_space<vmem>>, vector<8x32xf32>
    tpu.vector_store %arg12[%c0_15, %c0_16], %28 {strides = array<i32>} : memref<64x128xf32, #tpu.memory_space<vmem>>, vector<8x32xf32>,
    %c56 = arith.constant 56 : index
    %c32 = arith.constant 32 : index
    %31 = vector.load %arg12[%c56, %c32] : memref<64x128xf32, #tpu.memory_space<vmem>>, vector<8x32xf32>
    tpu.vector_store %arg12[%c56, %c32], %29 {strides = array<i32>} : memref<64x128xf32, #tpu.memory_space<vmem>>, vector<8x32xf32>,
    %c56_17 = arith.constant 56 : index
    %c64 = arith.constant 64 : index
    %32 = vector.load %arg12[%c56_17, %c64] : memref<64x128xf32, #tpu.memory_space<vmem>>, vector<8x32xf32>
    tpu.vector_store %arg12[%c56_17, %c64], %28 {strides = array<i32>} : memref<64x128xf32, #tpu.memory_space<vmem>>, vector<8x32xf32>,
    %c0_18 = arith.constant 0 : index
    %c96 = arith.constant 96 : index
    %33 = vector.load %arg12[%c0_18, %c96] : memref<64x128xf32, #tpu.memory_space<vmem>>, vector<8x32xf32>
    tpu.vector_store %arg12[%c0_18, %c96], %29 {strides = array<i32>} : memref<64x128xf32, #tpu.memory_space<vmem>>, vector<8x32xf32>,
    %c8 = arith.constant 8 : index
    %c0_19 = arith.constant 0 : index
    %34 = vector.load %arg11[%c8, %c0_19] : memref<64x256xf32, #tpu.memory_space<vmem>>, vector<8x256xf32>
    %cst_20 = arith.constant dense<0.000000e+00> : vector<8x256xf32>
    %35 = tpu.matmul %27, %7, %cst_20 {dimension_numbers = #tpu.dot_dimension_numbers<[1], [0], [0], [1], [0, 0, 1, 1], [], []>} : vector<8x64xf32>, vector<64x256xf32>, vector<8x256xf32> -> vector<8x256xf32>
    %36 = arith.addf %34, %35 : vector<8x256xf32>
    %37 = arith.negf %36 : vector<8x256xf32>
    %38 = math.exp %37 : vector<8x256xf32>
    %cst_21 = arith.constant 1.000000e+00 : f32
    %39 = vector.broadcast %cst_21 : f32 to vector<8x256xf32>
    %40 = arith.addf %39, %38 : vector<8x256xf32>
    %41 = arith.divf %39, %40 : vector<8x256xf32>
    %42 = math.tanh %36 : vector<8x256xf32>
    %43 = vector.extract_strided_slice %41 {offsets = [0, 0], sizes = [8, 64], strides = [1, 1]} : vector<8x256xf32> to vector<8x64xf32>
    %44 = vector.extract_strided_slice %41 {offsets = [0, 64], sizes = [8, 64], strides = [1, 1]} : vector<8x256xf32> to vector<8x64xf32>
    %45 = vector.extract_strided_slice %41 {offsets = [0, 128], sizes = [8, 64], strides = [1, 1]} : vector<8x256xf32> to vector<8x64xf32>
    %46 = vector.extract_strided_slice %42 {offsets = [0, 192], sizes = [8, 64], strides = [1, 1]} : vector<8x256xf32> to vector<8x64xf32>
    %47 = arith.mulf %44, %25 : vector<8x64xf32>
    %48 = arith.mulf %43, %46 : vector<8x64xf32>
    %49 = arith.addf %47, %48 : vector<8x64xf32>
    %50 = math.tanh %49 : vector<8x64xf32>
    %51 = arith.mulf %45, %50 : vector<8x64xf32>
    %52 = vector.extract_strided_slice %51 {offsets = [0, 0], sizes = [8, 32], strides = [1, 1]} : vector<8x64xf32> to vector<8x32xf32>
    %53 = vector.extract_strided_slice %51 {offsets = [0, 32], sizes = [8, 32], strides = [1, 1]} : vector<8x64xf32> to vector<8x32xf32>
    %c8_22 = arith.constant 8 : index
    %c0_23 = arith.constant 0 : index
    %54 = vector.load %arg12[%c8_22, %c0_23] : memref<64x128xf32, #tpu.memory_space<vmem>>, vector<8x32xf32>
    tpu.vector_store %arg12[%c8_22, %c0_23], %52 {strides = array<i32>} : memref<64x128xf32, #tpu.memory_space<vmem>>, vector<8x32xf32>,
    %c48 = arith.constant 48 : index
    %c32_24 = arith.constant 32 : index
    %55 = vector.load %arg12[%c48, %c32_24] : memref<64x128xf32, #tpu.memory_space<vmem>>, vector<8x32xf32>
    tpu.vector_store %arg12[%c48, %c32_24], %53 {strides = array<i32>} : memref<64x128xf32, #tpu.memory_space<vmem>>, vector<8x32xf32>,
    %c48_25 = arith.constant 48 : index
    %c64_26 = arith.constant 64 : index
    %56 = vector.load %arg12[%c48_25, %c64_26] : memref<64x128xf32, #tpu.memory_space<vmem>>, vector<8x32xf32>
    tpu.vector_store %arg12[%c48_25, %c64_26], %52 {strides = array<i32>} : memref<64x128xf32, #tpu.memory_space<vmem>>, vector<8x32xf32>,
    %c8_27 = arith.constant 8 : index
    %c96_28 = arith.constant 96 : index
    %57 = vector.load %arg12[%c8_27, %c96_28] : memref<64x128xf32, #tpu.memory_space<vmem>>, vector<8x32xf32>
    tpu.vector_store %arg12[%c8_27, %c96_28], %53 {strides = array<i32>} : memref<64x128xf32, #tpu.memory_space<vmem>>, vector<8x32xf32>,
    %c16 = arith.constant 16 : index
    %c0_29 = arith.constant 0 : index
    %58 = vector.load %arg11[%c16, %c0_29] : memref<64x256xf32, #tpu.memory_space<vmem>>, vector<8x256xf32>
    %cst_30 = arith.constant dense<0.000000e+00> : vector<8x256xf32>
    %59 = tpu.matmul %51, %7, %cst_30 {dimension_numbers = #tpu.dot_dimension_numbers<[1], [0], [0], [1], [0, 0, 1, 1], [], []>} : vector<8x64xf32>, vector<64x256xf32>, vector<8x256xf32> -> vector<8x256xf32>
    %60 = arith.addf %58, %59 : vector<8x256xf32>
    %61 = arith.negf %60 : vector<8x256xf32>
    %62 = math.exp %61 : vector<8x256xf32>
    %cst_31 = arith.constant 1.000000e+00 : f32
    %63 = vector.broadcast %cst_31 : f32 to vector<8x256xf32>
    %64 = arith.addf %63, %62 : vector<8x256xf32>
    %65 = arith.divf %63, %64 : vector<8x256xf32>
    %66 = math.tanh %60 : vector<8x256xf32>
    %67 = vector.extract_strided_slice %65 {offsets = [0, 0], sizes = [8, 64], strides = [1, 1]} : vector<8x256xf32> to vector<8x64xf32>
    %68 = vector.extract_strided_slice %65 {offsets = [0, 64], sizes = [8, 64], strides = [1, 1]} : vector<8x256xf32> to vector<8x64xf32>
    %69 = vector.extract_strided_slice %65 {offsets = [0, 128], sizes = [8, 64], strides = [1, 1]} : vector<8x256xf32> to vector<8x64xf32>
    %70 = vector.extract_strided_slice %66 {offsets = [0, 192], sizes = [8, 64], strides = [1, 1]} : vector<8x256xf32> to vector<8x64xf32>
    %71 = arith.mulf %68, %49 : vector<8x64xf32>
    %72 = arith.mulf %67, %70 : vector<8x64xf32>
    %73 = arith.addf %71, %72 : vector<8x64xf32>
    %74 = math.tanh %73 : vector<8x64xf32>
    %75 = arith.mulf %69, %74 : vector<8x64xf32>
    %76 = vector.extract_strided_slice %75 {offsets = [0, 0], sizes = [8, 32], strides = [1, 1]} : vector<8x64xf32> to vector<8x32xf32>
    %77 = vector.extract_strided_slice %75 {offsets = [0, 32], sizes = [8, 32], strides = [1, 1]} : vector<8x64xf32> to vector<8x32xf32>
    %c16_32 = arith.constant 16 : index
    %c0_33 = arith.constant 0 : index
    %78 = vector.load %arg12[%c16_32, %c0_33] : memref<64x128xf32, #tpu.memory_space<vmem>>, vector<8x32xf32>
    tpu.vector_store %arg12[%c16_32, %c0_33], %76 {strides = array<i32>} : memref<64x128xf32, #tpu.memory_space<vmem>>, vector<8x32xf32>,
    %c40 = arith.constant 40 : index
    %c32_34 = arith.constant 32 : index
    %79 = vector.load %arg12[%c40, %c32_34] : memref<64x128xf32, #tpu.memory_space<vmem>>, vector<8x32xf32>
    tpu.vector_store %arg12[%c40, %c32_34], %77 {strides = array<i32>} : memref<64x128xf32, #tpu.memory_space<vmem>>, vector<8x32xf32>,
    %c40_35 = arith.constant 40 : index
    %c64_36 = arith.constant 64 : index
    %80 = vector.load %arg12[%c40_35, %c64_36] : memref<64x128xf32, #tpu.memory_space<vmem>>, vector<8x32xf32>
    tpu.vector_store %arg12[%c40_35, %c64_36], %76 {strides = array<i32>} : memref<64x128xf32, #tpu.memory_space<vmem>>, vector<8x32xf32>,
    %c16_37 = arith.constant 16 : index
    %c96_38 = arith.constant 96 : index
    %81 = vector.load %arg12[%c16_37, %c96_38] : memref<64x128xf32, #tpu.memory_space<vmem>>, vector<8x32xf32>
    tpu.vector_store %arg12[%c16_37, %c96_38], %77 {strides = array<i32>} : memref<64x128xf32, #tpu.memory_space<vmem>>, vector<8x32xf32>,
    %c24 = arith.constant 24 : index
    %c0_39 = arith.constant 0 : index
    %82 = vector.load %arg11[%c24, %c0_39] : memref<64x256xf32, #tpu.memory_space<vmem>>, vector<8x256xf32>
    %cst_40 = arith.constant dense<0.000000e+00> : vector<8x256xf32>
    %83 = tpu.matmul %75, %7, %cst_40 {dimension_numbers = #tpu.dot_dimension_numbers<[1], [0], [0], [1], [0, 0, 1, 1], [], []>} : vector<8x64xf32>, vector<64x256xf32>, vector<8x256xf32> -> vector<8x256xf32>
    %84 = arith.addf %82, %83 : vector<8x256xf32>
    %85 = arith.negf %84 : vector<8x256xf32>
    %86 = math.exp %85 : vector<8x256xf32>
    %cst_41 = arith.constant 1.000000e+00 : f32
    %87 = vector.broadcast %cst_41 : f32 to vector<8x256xf32>
    %88 = arith.addf %87, %86 : vector<8x256xf32>
    %89 = arith.divf %87, %88 : vector<8x256xf32>
    %90 = math.tanh %84 : vector<8x256xf32>
    %91 = vector.extract_strided_slice %89 {offsets = [0, 0], sizes = [8, 64], strides = [1, 1]} : vector<8x256xf32> to vector<8x64xf32>
    %92 = vector.extract_strided_slice %89 {offsets = [0, 64], sizes = [8, 64], strides = [1, 1]} : vector<8x256xf32> to vector<8x64xf32>
    %93 = vector.extract_strided_slice %89 {offsets = [0, 128], sizes = [8, 64], strides = [1, 1]} : vector<8x256xf32> to vector<8x64xf32>
    %94 = vector.extract_strided_slice %90 {offsets = [0, 192], sizes = [8, 64], strides = [1, 1]} : vector<8x256xf32> to vector<8x64xf32>
    %95 = arith.mulf %92, %73 : vector<8x64xf32>
    %96 = arith.mulf %91, %94 : vector<8x64xf32>
    %97 = arith.addf %95, %96 : vector<8x64xf32>
    %98 = math.tanh %97 : vector<8x64xf32>
    %99 = arith.mulf %93, %98 : vector<8x64xf32>
    %100 = vector.extract_strided_slice %99 {offsets = [0, 0], sizes = [8, 32], strides = [1, 1]} : vector<8x64xf32> to vector<8x32xf32>
    %101 = vector.extract_strided_slice %99 {offsets = [0, 32], sizes = [8, 32], strides = [1, 1]} : vector<8x64xf32> to vector<8x32xf32>
    %c24_42 = arith.constant 24 : index
    %c0_43 = arith.constant 0 : index
    %102 = vector.load %arg12[%c24_42, %c0_43] : memref<64x128xf32, #tpu.memory_space<vmem>>, vector<8x32xf32>
    tpu.vector_store %arg12[%c24_42, %c0_43], %100 {strides = array<i32>} : memref<64x128xf32, #tpu.memory_space<vmem>>, vector<8x32xf32>,
    %c32_44 = arith.constant 32 : index
    %c32_45 = arith.constant 32 : index
    %103 = vector.load %arg12[%c32_44, %c32_45] : memref<64x128xf32, #tpu.memory_space<vmem>>, vector<8x32xf32>
    tpu.vector_store %arg12[%c32_44, %c32_45], %101 {strides = array<i32>} : memref<64x128xf32, #tpu.memory_space<vmem>>, vector<8x32xf32>,
    %c32_46 = arith.constant 32 : index
    %c64_47 = arith.constant 64 : index
    %104 = vector.load %arg12[%c32_46, %c64_47] : memref<64x128xf32, #tpu.memory_space<vmem>>, vector<8x32xf32>
    tpu.vector_store %arg12[%c32_46, %c64_47], %100 {strides = array<i32>} : memref<64x128xf32, #tpu.memory_space<vmem>>, vector<8x32xf32>,
    %c24_48 = arith.constant 24 : index
    %c96_49 = arith.constant 96 : index
    %105 = vector.load %arg12[%c24_48, %c96_49] : memref<64x128xf32, #tpu.memory_space<vmem>>, vector<8x32xf32>
    tpu.vector_store %arg12[%c24_48, %c96_49], %101 {strides = array<i32>} : memref<64x128xf32, #tpu.memory_space<vmem>>, vector<8x32xf32>,
    %c32_50 = arith.constant 32 : index
    %c0_51 = arith.constant 0 : index
    %106 = vector.load %arg11[%c32_50, %c0_51] : memref<64x256xf32, #tpu.memory_space<vmem>>, vector<8x256xf32>
    %cst_52 = arith.constant dense<0.000000e+00> : vector<8x256xf32>
    %107 = tpu.matmul %99, %7, %cst_52 {dimension_numbers = #tpu.dot_dimension_numbers<[1], [0], [0], [1], [0, 0, 1, 1], [], []>} : vector<8x64xf32>, vector<64x256xf32>, vector<8x256xf32> -> vector<8x256xf32>
    %108 = arith.addf %106, %107 : vector<8x256xf32>
    %109 = arith.negf %108 : vector<8x256xf32>
    %110 = math.exp %109 : vector<8x256xf32>
    %cst_53 = arith.constant 1.000000e+00 : f32
    %111 = vector.broadcast %cst_53 : f32 to vector<8x256xf32>
    %112 = arith.addf %111, %110 : vector<8x256xf32>
    %113 = arith.divf %111, %112 : vector<8x256xf32>
    %114 = math.tanh %108 : vector<8x256xf32>
    %115 = vector.extract_strided_slice %113 {offsets = [0, 0], sizes = [8, 64], strides = [1, 1]} : vector<8x256xf32> to vector<8x64xf32>
    %116 = vector.extract_strided_slice %113 {offsets = [0, 64], sizes = [8, 64], strides = [1, 1]} : vector<8x256xf32> to vector<8x64xf32>
    %117 = vector.extract_strided_slice %113 {offsets = [0, 128], sizes = [8, 64], strides = [1, 1]} : vector<8x256xf32> to vector<8x64xf32>
    %118 = vector.extract_strided_slice %114 {offsets = [0, 192], sizes = [8, 64], strides = [1, 1]} : vector<8x256xf32> to vector<8x64xf32>
    %119 = arith.mulf %116, %97 : vector<8x64xf32>
    %120 = arith.mulf %115, %118 : vector<8x64xf32>
    %121 = arith.addf %119, %120 : vector<8x64xf32>
    %122 = math.tanh %121 : vector<8x64xf32>
    %123 = arith.mulf %117, %122 : vector<8x64xf32>
    %124 = vector.extract_strided_slice %123 {offsets = [0, 0], sizes = [8, 32], strides = [1, 1]} : vector<8x64xf32> to vector<8x32xf32>
    %125 = vector.extract_strided_slice %123 {offsets = [0, 32], sizes = [8, 32], strides = [1, 1]} : vector<8x64xf32> to vector<8x32xf32>
    %c32_54 = arith.constant 32 : index
    %c0_55 = arith.constant 0 : index
    %126 = vector.load %arg12[%c32_54, %c0_55] : memref<64x128xf32, #tpu.memory_space<vmem>>, vector<8x32xf32>
    tpu.vector_store %arg12[%c32_54, %c0_55], %124 {strides = array<i32>} : memref<64x128xf32, #tpu.memory_space<vmem>>, vector<8x32xf32>,
    %c24_56 = arith.constant 24 : index
    %c32_57 = arith.constant 32 : index
    %127 = vector.load %arg12[%c24_56, %c32_57] : memref<64x128xf32, #tpu.memory_space<vmem>>, vector<8x32xf32>
    tpu.vector_store %arg12[%c24_56, %c32_57], %125 {strides = array<i32>} : memref<64x128xf32, #tpu.memory_space<vmem>>, vector<8x32xf32>,
    %c24_58 = arith.constant 24 : index
    %c64_59 = arith.constant 64 : index
    %128 = vector.load %arg12[%c24_58, %c64_59] : memref<64x128xf32, #tpu.memory_space<vmem>>, vector<8x32xf32>
    tpu.vector_store %arg12[%c24_58, %c64_59], %124 {strides = array<i32>} : memref<64x128xf32, #tpu.memory_space<vmem>>, vector<8x32xf32>,
    %c32_60 = arith.constant 32 : index
    %c96_61 = arith.constant 96 : index
    %129 = vector.load %arg12[%c32_60, %c96_61] : memref<64x128xf32, #tpu.memory_space<vmem>>, vector<8x32xf32>
    tpu.vector_store %arg12[%c32_60, %c96_61], %125 {strides = array<i32>} : memref<64x128xf32, #tpu.memory_space<vmem>>, vector<8x32xf32>,
    %c40_62 = arith.constant 40 : index
    %c0_63 = arith.constant 0 : index
    %130 = vector.load %arg11[%c40_62, %c0_63] : memref<64x256xf32, #tpu.memory_space<vmem>>, vector<8x256xf32>
    %cst_64 = arith.constant dense<0.000000e+00> : vector<8x256xf32>
    %131 = tpu.matmul %123, %7, %cst_64 {dimension_numbers = #tpu.dot_dimension_numbers<[1], [0], [0], [1], [0, 0, 1, 1], [], []>} : vector<8x64xf32>, vector<64x256xf32>, vector<8x256xf32> -> vector<8x256xf32>
    %132 = arith.addf %130, %131 : vector<8x256xf32>
    %133 = arith.negf %132 : vector<8x256xf32>
    %134 = math.exp %133 : vector<8x256xf32>
    %cst_65 = arith.constant 1.000000e+00 : f32
    %135 = vector.broadcast %cst_65 : f32 to vector<8x256xf32>
    %136 = arith.addf %135, %134 : vector<8x256xf32>
    %137 = arith.divf %135, %136 : vector<8x256xf32>
    %138 = math.tanh %132 : vector<8x256xf32>
    %139 = vector.extract_strided_slice %137 {offsets = [0, 0], sizes = [8, 64], strides = [1, 1]} : vector<8x256xf32> to vector<8x64xf32>
    %140 = vector.extract_strided_slice %137 {offsets = [0, 64], sizes = [8, 64], strides = [1, 1]} : vector<8x256xf32> to vector<8x64xf32>
    %141 = vector.extract_strided_slice %137 {offsets = [0, 128], sizes = [8, 64], strides = [1, 1]} : vector<8x256xf32> to vector<8x64xf32>
    %142 = vector.extract_strided_slice %138 {offsets = [0, 192], sizes = [8, 64], strides = [1, 1]} : vector<8x256xf32> to vector<8x64xf32>
    %143 = arith.mulf %140, %121 : vector<8x64xf32>
    %144 = arith.mulf %139, %142 : vector<8x64xf32>
    %145 = arith.addf %143, %144 : vector<8x64xf32>
    %146 = math.tanh %145 : vector<8x64xf32>
    %147 = arith.mulf %141, %146 : vector<8x64xf32>
    %148 = vector.extract_strided_slice %147 {offsets = [0, 0], sizes = [8, 32], strides = [1, 1]} : vector<8x64xf32> to vector<8x32xf32>
    %149 = vector.extract_strided_slice %147 {offsets = [0, 32], sizes = [8, 32], strides = [1, 1]} : vector<8x64xf32> to vector<8x32xf32>
    %c40_66 = arith.constant 40 : index
    %c0_67 = arith.constant 0 : index
    %150 = vector.load %arg12[%c40_66, %c0_67] : memref<64x128xf32, #tpu.memory_space<vmem>>, vector<8x32xf32>
    tpu.vector_store %arg12[%c40_66, %c0_67], %148 {strides = array<i32>} : memref<64x128xf32, #tpu.memory_space<vmem>>, vector<8x32xf32>,
    %c16_68 = arith.constant 16 : index
    %c32_69 = arith.constant 32 : index
    %151 = vector.load %arg12[%c16_68, %c32_69] : memref<64x128xf32, #tpu.memory_space<vmem>>, vector<8x32xf32>
    tpu.vector_store %arg12[%c16_68, %c32_69], %149 {strides = array<i32>} : memref<64x128xf32, #tpu.memory_space<vmem>>, vector<8x32xf32>,
    %c16_70 = arith.constant 16 : index
    %c64_71 = arith.constant 64 : index
    %152 = vector.load %arg12[%c16_70, %c64_71] : memref<64x128xf32, #tpu.memory_space<vmem>>, vector<8x32xf32>
    tpu.vector_store %arg12[%c16_70, %c64_71], %148 {strides = array<i32>} : memref<64x128xf32, #tpu.memory_space<vmem>>, vector<8x32xf32>,
    %c40_72 = arith.constant 40 : index
    %c96_73 = arith.constant 96 : index
    %153 = vector.load %arg12[%c40_72, %c96_73] : memref<64x128xf32, #tpu.memory_space<vmem>>, vector<8x32xf32>
    tpu.vector_store %arg12[%c40_72, %c96_73], %149 {strides = array<i32>} : memref<64x128xf32, #tpu.memory_space<vmem>>, vector<8x32xf32>,
    %c48_74 = arith.constant 48 : index
    %c0_75 = arith.constant 0 : index
    %154 = vector.load %arg11[%c48_74, %c0_75] : memref<64x256xf32, #tpu.memory_space<vmem>>, vector<8x256xf32>
    %cst_76 = arith.constant dense<0.000000e+00> : vector<8x256xf32>
    %155 = tpu.matmul %147, %7, %cst_76 {dimension_numbers = #tpu.dot_dimension_numbers<[1], [0], [0], [1], [0, 0, 1, 1], [], []>} : vector<8x64xf32>, vector<64x256xf32>, vector<8x256xf32> -> vector<8x256xf32>
    %156 = arith.addf %154, %155 : vector<8x256xf32>
    %157 = arith.negf %156 : vector<8x256xf32>
    %158 = math.exp %157 : vector<8x256xf32>
    %cst_77 = arith.constant 1.000000e+00 : f32
    %159 = vector.broadcast %cst_77 : f32 to vector<8x256xf32>
    %160 = arith.addf %159, %158 : vector<8x256xf32>
    %161 = arith.divf %159, %160 : vector<8x256xf32>
    %162 = math.tanh %156 : vector<8x256xf32>
    %163 = vector.extract_strided_slice %161 {offsets = [0, 0], sizes = [8, 64], strides = [1, 1]} : vector<8x256xf32> to vector<8x64xf32>
    %164 = vector.extract_strided_slice %161 {offsets = [0, 64], sizes = [8, 64], strides = [1, 1]} : vector<8x256xf32> to vector<8x64xf32>
    %165 = vector.extract_strided_slice %161 {offsets = [0, 128], sizes = [8, 64], strides = [1, 1]} : vector<8x256xf32> to vector<8x64xf32>
    %166 = vector.extract_strided_slice %162 {offsets = [0, 192], sizes = [8, 64], strides = [1, 1]} : vector<8x256xf32> to vector<8x64xf32>
    %167 = arith.mulf %164, %145 : vector<8x64xf32>
    %168 = arith.mulf %163, %166 : vector<8x64xf32>
    %169 = arith.addf %167, %168 : vector<8x64xf32>
    %170 = math.tanh %169 : vector<8x64xf32>
    %171 = arith.mulf %165, %170 : vector<8x64xf32>
    %172 = vector.extract_strided_slice %171 {offsets = [0, 0], sizes = [8, 32], strides = [1, 1]} : vector<8x64xf32> to vector<8x32xf32>
    %173 = vector.extract_strided_slice %171 {offsets = [0, 32], sizes = [8, 32], strides = [1, 1]} : vector<8x64xf32> to vector<8x32xf32>
    %c48_78 = arith.constant 48 : index
    %c0_79 = arith.constant 0 : index
    %174 = vector.load %arg12[%c48_78, %c0_79] : memref<64x128xf32, #tpu.memory_space<vmem>>, vector<8x32xf32>
    tpu.vector_store %arg12[%c48_78, %c0_79], %172 {strides = array<i32>} : memref<64x128xf32, #tpu.memory_space<vmem>>, vector<8x32xf32>,
    %c8_80 = arith.constant 8 : index
    %c32_81 = arith.constant 32 : index
    %175 = vector.load %arg12[%c8_80, %c32_81] : memref<64x128xf32, #tpu.memory_space<vmem>>, vector<8x32xf32>
    tpu.vector_store %arg12[%c8_80, %c32_81], %173 {strides = array<i32>} : memref<64x128xf32, #tpu.memory_space<vmem>>, vector<8x32xf32>,
    %c8_82 = arith.constant 8 : index
    %c64_83 = arith.constant 64 : index
    %176 = vector.load %arg12[%c8_82, %c64_83] : memref<64x128xf32, #tpu.memory_space<vmem>>, vector<8x32xf32>
    tpu.vector_store %arg12[%c8_82, %c64_83], %172 {strides = array<i32>} : memref<64x128xf32, #tpu.memory_space<vmem>>, vector<8x32xf32>,
    %c48_84 = arith.constant 48 : index
    %c96_85 = arith.constant 96 : index
    %177 = vector.load %arg12[%c48_84, %c96_85] : memref<64x128xf32, #tpu.memory_space<vmem>>, vector<8x32xf32>
    tpu.vector_store %arg12[%c48_84, %c96_85], %173 {strides = array<i32>} : memref<64x128xf32, #tpu.memory_space<vmem>>, vector<8x32xf32>,
    %c56_86 = arith.constant 56 : index
    %c0_87 = arith.constant 0 : index
    %178 = vector.load %arg11[%c56_86, %c0_87] : memref<64x256xf32, #tpu.memory_space<vmem>>, vector<8x256xf32>
    %cst_88 = arith.constant dense<0.000000e+00> : vector<8x256xf32>
    %179 = tpu.matmul %171, %7, %cst_88 {dimension_numbers = #tpu.dot_dimension_numbers<[1], [0], [0], [1], [0, 0, 1, 1], [], []>} : vector<8x64xf32>, vector<64x256xf32>, vector<8x256xf32> -> vector<8x256xf32>
    %180 = arith.addf %178, %179 : vector<8x256xf32>
    %181 = arith.negf %180 : vector<8x256xf32>
    %182 = math.exp %181 : vector<8x256xf32>
    %cst_89 = arith.constant 1.000000e+00 : f32
    %183 = vector.broadcast %cst_89 : f32 to vector<8x256xf32>
    %184 = arith.addf %183, %182 : vector<8x256xf32>
    %185 = arith.divf %183, %184 : vector<8x256xf32>
    %186 = math.tanh %180 : vector<8x256xf32>
    %187 = vector.extract_strided_slice %185 {offsets = [0, 0], sizes = [8, 64], strides = [1, 1]} : vector<8x256xf32> to vector<8x64xf32>
    %188 = vector.extract_strided_slice %185 {offsets = [0, 64], sizes = [8, 64], strides = [1, 1]} : vector<8x256xf32> to vector<8x64xf32>
    %189 = vector.extract_strided_slice %185 {offsets = [0, 128], sizes = [8, 64], strides = [1, 1]} : vector<8x256xf32> to vector<8x64xf32>
    %190 = vector.extract_strided_slice %186 {offsets = [0, 192], sizes = [8, 64], strides = [1, 1]} : vector<8x256xf32> to vector<8x64xf32>
    %191 = arith.mulf %188, %169 : vector<8x64xf32>
    %192 = arith.mulf %187, %190 : vector<8x64xf32>
    %193 = arith.addf %191, %192 : vector<8x64xf32>
    %194 = math.tanh %193 : vector<8x64xf32>
    %195 = arith.mulf %189, %194 : vector<8x64xf32>
    %196 = vector.extract_strided_slice %195 {offsets = [0, 0], sizes = [8, 32], strides = [1, 1]} : vector<8x64xf32> to vector<8x32xf32>
    %197 = vector.extract_strided_slice %195 {offsets = [0, 32], sizes = [8, 32], strides = [1, 1]} : vector<8x64xf32> to vector<8x32xf32>
    %c56_90 = arith.constant 56 : index
    %c0_91 = arith.constant 0 : index
    %198 = vector.load %arg12[%c56_90, %c0_91] : memref<64x128xf32, #tpu.memory_space<vmem>>, vector<8x32xf32>
    tpu.vector_store %arg12[%c56_90, %c0_91], %196 {strides = array<i32>} : memref<64x128xf32, #tpu.memory_space<vmem>>, vector<8x32xf32>,
    %c0_92 = arith.constant 0 : index
    %c32_93 = arith.constant 32 : index
    %199 = vector.load %arg12[%c0_92, %c32_93] : memref<64x128xf32, #tpu.memory_space<vmem>>, vector<8x32xf32>
    tpu.vector_store %arg12[%c0_92, %c32_93], %197 {strides = array<i32>} : memref<64x128xf32, #tpu.memory_space<vmem>>, vector<8x32xf32>,
    %c0_94 = arith.constant 0 : index
    %c64_95 = arith.constant 64 : index
    %200 = vector.load %arg12[%c0_94, %c64_95] : memref<64x128xf32, #tpu.memory_space<vmem>>, vector<8x32xf32>
    tpu.vector_store %arg12[%c0_94, %c64_95], %196 {strides = array<i32>} : memref<64x128xf32, #tpu.memory_space<vmem>>, vector<8x32xf32>,
    %c56_96 = arith.constant 56 : index
    %c96_97 = arith.constant 96 : index
    %201 = vector.load %arg12[%c56_96, %c96_97] : memref<64x128xf32, #tpu.memory_space<vmem>>, vector<8x32xf32>
    tpu.vector_store %arg12[%c56_96, %c96_97], %197 {strides = array<i32>} : memref<64x128xf32, #tpu.memory_space<vmem>>, vector<8x32xf32>,
    %c0_98 = arith.constant 0 : index
    %c0_99 = arith.constant 0 : index
    %c0_100 = arith.constant 0 : index
    %202 = vector.load %arg10[%c0_98, %c0_99, %c0_100] : memref<2x8x64xf32, #tpu.memory_space<vmem>>, vector<1x8x64xf32>
    %203 = vector.shape_cast %202 : vector<1x8x64xf32> to vector<8x64xf32>
    %204 = vector.shape_cast %195 : vector<8x64xf32> to vector<1x8x64xf32>
    tpu.vector_store %arg10[%c0_98, %c0_99, %c0_100], %204 {strides = array<i32>} : memref<2x8x64xf32, #tpu.memory_space<vmem>>, vector<1x8x64xf32>,
    %c0_101 = arith.constant 0 : index
    %c0_102 = arith.constant 0 : index
    %205 = vector.load %arg12[%c0_101, %c0_102] : memref<64x128xf32, #tpu.memory_space<vmem>>, vector<64x128xf32>
    %c0_103 = arith.constant 0 : index
    %c0_104 = arith.constant 0 : index
    %206 = vector.load %arg4[%c0_103, %c0_104] : memref<128x256xf32, #tpu.memory_space<vmem>>, vector<128x256xf32>
    %cst_105 = arith.constant dense<0.000000e+00> : vector<64x256xf32>
    %207 = tpu.matmul %205, %206, %cst_105 {dimension_numbers = #tpu.dot_dimension_numbers<[1], [0], [0], [1], [0, 0, 1, 1], [], []>} : vector<64x128xf32>, vector<128x256xf32>, vector<64x256xf32> -> vector<64x256xf32>
    %c0_106 = arith.constant 0 : index
    %c0_107 = arith.constant 0 : index
    %208 = vector.load %arg6[%c0_106, %c0_107] : memref<1x256xf32, #tpu.memory_space<vmem>>, vector<1x256xf32>
    %209 = vector.broadcast %208 : vector<1x256xf32> to vector<64x256xf32>
    %210 = arith.addf %207, %209 : vector<64x256xf32>
    %c0_108 = arith.constant 0 : index
    %c0_109 = arith.constant 0 : index
    %211 = vector.load %arg11[%c0_108, %c0_109] : memref<64x256xf32, #tpu.memory_space<vmem>>, vector<64x256xf32>
    tpu.vector_store %arg11[%c0_108, %c0_109], %210 {strides = array<i32>} : memref<64x256xf32, #tpu.memory_space<vmem>>, vector<64x256xf32>,
    %c0_110 = arith.constant 0 : index
    %c0_111 = arith.constant 0 : index
    %212 = vector.load %arg5[%c0_110, %c0_111] : memref<64x256xf32, #tpu.memory_space<vmem>>, vector<64x256xf32>
    %cst_112 = arith.constant 0.000000e+00 : f32
    %213 = vector.broadcast %cst_112 : f32 to vector<8x64xf32>
    %cst_113 = arith.constant 0.000000e+00 : f32
    %214 = vector.broadcast %cst_113 : f32 to vector<8x64xf32>
    %c0_114 = arith.constant 0 : index
    %c0_115 = arith.constant 0 : index
    %215 = vector.load %arg11[%c0_114, %c0_115] : memref<64x256xf32, #tpu.memory_space<vmem>>, vector<8x256xf32>
    %cst_116 = arith.constant dense<0.000000e+00> : vector<8x256xf32>
    %216 = tpu.matmul %213, %212, %cst_116 {dimension_numbers = #tpu.dot_dimension_numbers<[1], [0], [0], [1], [0, 0, 1, 1], [], []>} : vector<8x64xf32>, vector<64x256xf32>, vector<8x256xf32> -> vector<8x256xf32>
    %217 = arith.addf %215, %216 : vector<8x256xf32>
    %218 = arith.negf %217 : vector<8x256xf32>
    %219 = math.exp %218 : vector<8x256xf32>
    %cst_117 = arith.constant 1.000000e+00 : f32
    %220 = vector.broadcast %cst_117 : f32 to vector<8x256xf32>
    %221 = arith.addf %220, %219 : vector<8x256xf32>
    %222 = arith.divf %220, %221 : vector<8x256xf32>
    %223 = math.tanh %217 : vector<8x256xf32>
    %224 = vector.extract_strided_slice %222 {offsets = [0, 0], sizes = [8, 64], strides = [1, 1]} : vector<8x256xf32> to vector<8x64xf32>
    %225 = vector.extract_strided_slice %222 {offsets = [0, 64], sizes = [8, 64], strides = [1, 1]} : vector<8x256xf32> to vector<8x64xf32>
    %226 = vector.extract_strided_slice %222 {offsets = [0, 128], sizes = [8, 64], strides = [1, 1]} : vector<8x256xf32> to vector<8x64xf32>
    %227 = vector.extract_strided_slice %223 {offsets = [0, 192], sizes = [8, 64], strides = [1, 1]} : vector<8x256xf32> to vector<8x64xf32>
    %228 = arith.mulf %225, %214 : vector<8x64xf32>
    %229 = arith.mulf %224, %227 : vector<8x64xf32>
    %230 = arith.addf %228, %229 : vector<8x64xf32>
    %231 = math.tanh %230 : vector<8x64xf32>
    %232 = arith.mulf %226, %231 : vector<8x64xf32>
    %233 = vector.extract_strided_slice %232 {offsets = [0, 0], sizes = [8, 32], strides = [1, 1]} : vector<8x64xf32> to vector<8x32xf32>
    %c0_118 = arith.constant 0 : index
    %c0_119 = arith.constant 0 : index
    %234 = vector.load %arg13[%c0_118, %c0_119] : memref<64x64xf32, #tpu.memory_space<vmem>>, vector<8x32xf32>
    tpu.vector_store %arg13[%c0_118, %c0_119], %233 {strides = array<i32>} : memref<64x64xf32, #tpu.memory_space<vmem>>, vector<8x32xf32>,
    %235 = vector.extract_strided_slice %232 {offsets = [0, 32], sizes = [8, 32], strides = [1, 1]} : vector<8x64xf32> to vector<8x32xf32>
    %c56_120 = arith.constant 56 : index
    %c32_121 = arith.constant 32 : index
    %236 = vector.load %arg13[%c56_120, %c32_121] : memref<64x64xf32, #tpu.memory_space<vmem>>, vector<8x32xf32>
    tpu.vector_store %arg13[%c56_120, %c32_121], %235 {strides = array<i32>} : memref<64x64xf32, #tpu.memory_space<vmem>>, vector<8x32xf32>,
    %c8_122 = arith.constant 8 : index
    %c0_123 = arith.constant 0 : index
    %237 = vector.load %arg11[%c8_122, %c0_123] : memref<64x256xf32, #tpu.memory_space<vmem>>, vector<8x256xf32>
    %cst_124 = arith.constant dense<0.000000e+00> : vector<8x256xf32>
    %238 = tpu.matmul %232, %212, %cst_124 {dimension_numbers = #tpu.dot_dimension_numbers<[1], [0], [0], [1], [0, 0, 1, 1], [], []>} : vector<8x64xf32>, vector<64x256xf32>, vector<8x256xf32> -> vector<8x256xf32>
    %239 = arith.addf %237, %238 : vector<8x256xf32>
    %240 = arith.negf %239 : vector<8x256xf32>
    %241 = math.exp %240 : vector<8x256xf32>
    %cst_125 = arith.constant 1.000000e+00 : f32
    %242 = vector.broadcast %cst_125 : f32 to vector<8x256xf32>
    %243 = arith.addf %242, %241 : vector<8x256xf32>
    %244 = arith.divf %242, %243 : vector<8x256xf32>
    %245 = math.tanh %239 : vector<8x256xf32>
    %246 = vector.extract_strided_slice %244 {offsets = [0, 0], sizes = [8, 64], strides = [1, 1]} : vector<8x256xf32> to vector<8x64xf32>
    %247 = vector.extract_strided_slice %244 {offsets = [0, 64], sizes = [8, 64], strides = [1, 1]} : vector<8x256xf32> to vector<8x64xf32>
    %248 = vector.extract_strided_slice %244 {offsets = [0, 128], sizes = [8, 64], strides = [1, 1]} : vector<8x256xf32> to vector<8x64xf32>
    %249 = vector.extract_strided_slice %245 {offsets = [0, 192], sizes = [8, 64], strides = [1, 1]} : vector<8x256xf32> to vector<8x64xf32>
    %250 = arith.mulf %247, %230 : vector<8x64xf32>
    %251 = arith.mulf %246, %249 : vector<8x64xf32>
    %252 = arith.addf %250, %251 : vector<8x64xf32>
    %253 = math.tanh %252 : vector<8x64xf32>
    %254 = arith.mulf %248, %253 : vector<8x64xf32>
    %255 = vector.extract_strided_slice %254 {offsets = [0, 0], sizes = [8, 32], strides = [1, 1]} : vector<8x64xf32> to vector<8x32xf32>
    %c8_126 = arith.constant 8 : index
    %c0_127 = arith.constant 0 : index
    %256 = vector.load %arg13[%c8_126, %c0_127] : memref<64x64xf32, #tpu.memory_space<vmem>>, vector<8x32xf32>
    tpu.vector_store %arg13[%c8_126, %c0_127], %255 {strides = array<i32>} : memref<64x64xf32, #tpu.memory_space<vmem>>, vector<8x32xf32>,
    %257 = vector.extract_strided_slice %254 {offsets = [0, 32], sizes = [8, 32], strides = [1, 1]} : vector<8x64xf32> to vector<8x32xf32>
    %c48_128 = arith.constant 48 : index
    %c32_129 = arith.constant 32 : index
    %258 = vector.load %arg13[%c48_128, %c32_129] : memref<64x64xf32, #tpu.memory_space<vmem>>, vector<8x32xf32>
    tpu.vector_store %arg13[%c48_128, %c32_129], %257 {strides = array<i32>} : memref<64x64xf32, #tpu.memory_space<vmem>>, vector<8x32xf32>,
    %c16_130 = arith.constant 16 : index
    %c0_131 = arith.constant 0 : index
    %259 = vector.load %arg11[%c16_130, %c0_131] : memref<64x256xf32, #tpu.memory_space<vmem>>, vector<8x256xf32>
    %cst_132 = arith.constant dense<0.000000e+00> : vector<8x256xf32>
    %260 = tpu.matmul %254, %212, %cst_132 {dimension_numbers = #tpu.dot_dimension_numbers<[1], [0], [0], [1], [0, 0, 1, 1], [], []>} : vector<8x64xf32>, vector<64x256xf32>, vector<8x256xf32> -> vector<8x256xf32>
    %261 = arith.addf %259, %260 : vector<8x256xf32>
    %262 = arith.negf %261 : vector<8x256xf32>
    %263 = math.exp %262 : vector<8x256xf32>
    %cst_133 = arith.constant 1.000000e+00 : f32
    %264 = vector.broadcast %cst_133 : f32 to vector<8x256xf32>
    %265 = arith.addf %264, %263 : vector<8x256xf32>
    %266 = arith.divf %264, %265 : vector<8x256xf32>
    %267 = math.tanh %261 : vector<8x256xf32>
    %268 = vector.extract_strided_slice %266 {offsets = [0, 0], sizes = [8, 64], strides = [1, 1]} : vector<8x256xf32> to vector<8x64xf32>
    %269 = vector.extract_strided_slice %266 {offsets = [0, 64], sizes = [8, 64], strides = [1, 1]} : vector<8x256xf32> to vector<8x64xf32>
    %270 = vector.extract_strided_slice %266 {offsets = [0, 128], sizes = [8, 64], strides = [1, 1]} : vector<8x256xf32> to vector<8x64xf32>
    %271 = vector.extract_strided_slice %267 {offsets = [0, 192], sizes = [8, 64], strides = [1, 1]} : vector<8x256xf32> to vector<8x64xf32>
    %272 = arith.mulf %269, %252 : vector<8x64xf32>
    %273 = arith.mulf %268, %271 : vector<8x64xf32>
    %274 = arith.addf %272, %273 : vector<8x64xf32>
    %275 = math.tanh %274 : vector<8x64xf32>
    %276 = arith.mulf %270, %275 : vector<8x64xf32>
    %277 = vector.extract_strided_slice %276 {offsets = [0, 0], sizes = [8, 32], strides = [1, 1]} : vector<8x64xf32> to vector<8x32xf32>
    %c16_134 = arith.constant 16 : index
    %c0_135 = arith.constant 0 : index
    %278 = vector.load %arg13[%c16_134, %c0_135] : memref<64x64xf32, #tpu.memory_space<vmem>>, vector<8x32xf32>
    tpu.vector_store %arg13[%c16_134, %c0_135], %277 {strides = array<i32>} : memref<64x64xf32, #tpu.memory_space<vmem>>, vector<8x32xf32>,
    %279 = vector.extract_strided_slice %276 {offsets = [0, 32], sizes = [8, 32], strides = [1, 1]} : vector<8x64xf32> to vector<8x32xf32>
    %c40_136 = arith.constant 40 : index
    %c32_137 = arith.constant 32 : index
    %280 = vector.load %arg13[%c40_136, %c32_137] : memref<64x64xf32, #tpu.memory_space<vmem>>, vector<8x32xf32>
    tpu.vector_store %arg13[%c40_136, %c32_137], %279 {strides = array<i32>} : memref<64x64xf32, #tpu.memory_space<vmem>>, vector<8x32xf32>,
    %c24_138 = arith.constant 24 : index
    %c0_139 = arith.constant 0 : index
    %281 = vector.load %arg11[%c24_138, %c0_139] : memref<64x256xf32, #tpu.memory_space<vmem>>, vector<8x256xf32>
    %cst_140 = arith.constant dense<0.000000e+00> : vector<8x256xf32>
    %282 = tpu.matmul %276, %212, %cst_140 {dimension_numbers = #tpu.dot_dimension_numbers<[1], [0], [0], [1], [0, 0, 1, 1], [], []>} : vector<8x64xf32>, vector<64x256xf32>, vector<8x256xf32> -> vector<8x256xf32>
    %283 = arith.addf %281, %282 : vector<8x256xf32>
    %284 = arith.negf %283 : vector<8x256xf32>
    %285 = math.exp %284 : vector<8x256xf32>
    %cst_141 = arith.constant 1.000000e+00 : f32
    %286 = vector.broadcast %cst_141 : f32 to vector<8x256xf32>
    %287 = arith.addf %286, %285 : vector<8x256xf32>
    %288 = arith.divf %286, %287 : vector<8x256xf32>
    %289 = math.tanh %283 : vector<8x256xf32>
    %290 = vector.extract_strided_slice %288 {offsets = [0, 0], sizes = [8, 64], strides = [1, 1]} : vector<8x256xf32> to vector<8x64xf32>
    %291 = vector.extract_strided_slice %288 {offsets = [0, 64], sizes = [8, 64], strides = [1, 1]} : vector<8x256xf32> to vector<8x64xf32>
    %292 = vector.extract_strided_slice %288 {offsets = [0, 128], sizes = [8, 64], strides = [1, 1]} : vector<8x256xf32> to vector<8x64xf32>
    %293 = vector.extract_strided_slice %289 {offsets = [0, 192], sizes = [8, 64], strides = [1, 1]} : vector<8x256xf32> to vector<8x64xf32>
    %294 = arith.mulf %291, %274 : vector<8x64xf32>
    %295 = arith.mulf %290, %293 : vector<8x64xf32>
    %296 = arith.addf %294, %295 : vector<8x64xf32>
    %297 = math.tanh %296 : vector<8x64xf32>
    %298 = arith.mulf %292, %297 : vector<8x64xf32>
    %299 = vector.extract_strided_slice %298 {offsets = [0, 0], sizes = [8, 32], strides = [1, 1]} : vector<8x64xf32> to vector<8x32xf32>
    %c24_142 = arith.constant 24 : index
    %c0_143 = arith.constant 0 : index
    %300 = vector.load %arg13[%c24_142, %c0_143] : memref<64x64xf32, #tpu.memory_space<vmem>>, vector<8x32xf32>
    tpu.vector_store %arg13[%c24_142, %c0_143], %299 {strides = array<i32>} : memref<64x64xf32, #tpu.memory_space<vmem>>, vector<8x32xf32>,
    %301 = vector.extract_strided_slice %298 {offsets = [0, 32], sizes = [8, 32], strides = [1, 1]} : vector<8x64xf32> to vector<8x32xf32>
    %c32_144 = arith.constant 32 : index
    %c32_145 = arith.constant 32 : index
    %302 = vector.load %arg13[%c32_144, %c32_145] : memref<64x64xf32, #tpu.memory_space<vmem>>, vector<8x32xf32>
    tpu.vector_store %arg13[%c32_144, %c32_145], %301 {strides = array<i32>} : memref<64x64xf32, #tpu.memory_space<vmem>>, vector<8x32xf32>,
    %c32_146 = arith.constant 32 : index
    %c0_147 = arith.constant 0 : index
    %303 = vector.load %arg11[%c32_146, %c0_147] : memref<64x256xf32, #tpu.memory_space<vmem>>, vector<8x256xf32>
    %cst_148 = arith.constant dense<0.000000e+00> : vector<8x256xf32>
    %304 = tpu.matmul %298, %212, %cst_148 {dimension_numbers = #tpu.dot_dimension_numbers<[1], [0], [0], [1], [0, 0, 1, 1], [], []>} : vector<8x64xf32>, vector<64x256xf32>, vector<8x256xf32> -> vector<8x256xf32>
    %305 = arith.addf %303, %304 : vector<8x256xf32>
    %306 = arith.negf %305 : vector<8x256xf32>
    %307 = math.exp %306 : vector<8x256xf32>
    %cst_149 = arith.constant 1.000000e+00 : f32
    %308 = vector.broadcast %cst_149 : f32 to vector<8x256xf32>
    %309 = arith.addf %308, %307 : vector<8x256xf32>
    %310 = arith.divf %308, %309 : vector<8x256xf32>
    %311 = math.tanh %305 : vector<8x256xf32>
    %312 = vector.extract_strided_slice %310 {offsets = [0, 0], sizes = [8, 64], strides = [1, 1]} : vector<8x256xf32> to vector<8x64xf32>
    %313 = vector.extract_strided_slice %310 {offsets = [0, 64], sizes = [8, 64], strides = [1, 1]} : vector<8x256xf32> to vector<8x64xf32>
    %314 = vector.extract_strided_slice %310 {offsets = [0, 128], sizes = [8, 64], strides = [1, 1]} : vector<8x256xf32> to vector<8x64xf32>
    %315 = vector.extract_strided_slice %311 {offsets = [0, 192], sizes = [8, 64], strides = [1, 1]} : vector<8x256xf32> to vector<8x64xf32>
    %316 = arith.mulf %313, %296 : vector<8x64xf32>
    %317 = arith.mulf %312, %315 : vector<8x64xf32>
    %318 = arith.addf %316, %317 : vector<8x64xf32>
    %319 = math.tanh %318 : vector<8x64xf32>
    %320 = arith.mulf %314, %319 : vector<8x64xf32>
    %321 = vector.extract_strided_slice %320 {offsets = [0, 0], sizes = [8, 32], strides = [1, 1]} : vector<8x64xf32> to vector<8x32xf32>
    %c32_150 = arith.constant 32 : index
    %c0_151 = arith.constant 0 : index
    %322 = vector.load %arg13[%c32_150, %c0_151] : memref<64x64xf32, #tpu.memory_space<vmem>>, vector<8x32xf32>
    tpu.vector_store %arg13[%c32_150, %c0_151], %321 {strides = array<i32>} : memref<64x64xf32, #tpu.memory_space<vmem>>, vector<8x32xf32>,
    %323 = vector.extract_strided_slice %320 {offsets = [0, 32], sizes = [8, 32], strides = [1, 1]} : vector<8x64xf32> to vector<8x32xf32>
    %c24_152 = arith.constant 24 : index
    %c32_153 = arith.constant 32 : index
    %324 = vector.load %arg13[%c24_152, %c32_153] : memref<64x64xf32, #tpu.memory_space<vmem>>, vector<8x32xf32>
    tpu.vector_store %arg13[%c24_152, %c32_153], %323 {strides = array<i32>} : memref<64x64xf32, #tpu.memory_space<vmem>>, vector<8x32xf32>,
    %c40_154 = arith.constant 40 : index
    %c0_155 = arith.constant 0 : index
    %325 = vector.load %arg11[%c40_154, %c0_155] : memref<64x256xf32, #tpu.memory_space<vmem>>, vector<8x256xf32>
    %cst_156 = arith.constant dense<0.000000e+00> : vector<8x256xf32>
    %326 = tpu.matmul %320, %212, %cst_156 {dimension_numbers = #tpu.dot_dimension_numbers<[1], [0], [0], [1], [0, 0, 1, 1], [], []>} : vector<8x64xf32>, vector<64x256xf32>, vector<8x256xf32> -> vector<8x256xf32>
    %327 = arith.addf %325, %326 : vector<8x256xf32>
    %328 = arith.negf %327 : vector<8x256xf32>
    %329 = math.exp %328 : vector<8x256xf32>
    %cst_157 = arith.constant 1.000000e+00 : f32
    %330 = vector.broadcast %cst_157 : f32 to vector<8x256xf32>
    %331 = arith.addf %330, %329 : vector<8x256xf32>
    %332 = arith.divf %330, %331 : vector<8x256xf32>
    %333 = math.tanh %327 : vector<8x256xf32>
    %334 = vector.extract_strided_slice %332 {offsets = [0, 0], sizes = [8, 64], strides = [1, 1]} : vector<8x256xf32> to vector<8x64xf32>
    %335 = vector.extract_strided_slice %332 {offsets = [0, 64], sizes = [8, 64], strides = [1, 1]} : vector<8x256xf32> to vector<8x64xf32>
    %336 = vector.extract_strided_slice %332 {offsets = [0, 128], sizes = [8, 64], strides = [1, 1]} : vector<8x256xf32> to vector<8x64xf32>
    %337 = vector.extract_strided_slice %333 {offsets = [0, 192], sizes = [8, 64], strides = [1, 1]} : vector<8x256xf32> to vector<8x64xf32>
    %338 = arith.mulf %335, %318 : vector<8x64xf32>
    %339 = arith.mulf %334, %337 : vector<8x64xf32>
    %340 = arith.addf %338, %339 : vector<8x64xf32>
    %341 = math.tanh %340 : vector<8x64xf32>
    %342 = arith.mulf %336, %341 : vector<8x64xf32>
    %343 = vector.extract_strided_slice %342 {offsets = [0, 0], sizes = [8, 32], strides = [1, 1]} : vector<8x64xf32> to vector<8x32xf32>
    %c40_158 = arith.constant 40 : index
    %c0_159 = arith.constant 0 : index
    %344 = vector.load %arg13[%c40_158, %c0_159] : memref<64x64xf32, #tpu.memory_space<vmem>>, vector<8x32xf32>
    tpu.vector_store %arg13[%c40_158, %c0_159], %343 {strides = array<i32>} : memref<64x64xf32, #tpu.memory_space<vmem>>, vector<8x32xf32>,
    %345 = vector.extract_strided_slice %342 {offsets = [0, 32], sizes = [8, 32], strides = [1, 1]} : vector<8x64xf32> to vector<8x32xf32>
    %c16_160 = arith.constant 16 : index
    %c32_161 = arith.constant 32 : index
    %346 = vector.load %arg13[%c16_160, %c32_161] : memref<64x64xf32, #tpu.memory_space<vmem>>, vector<8x32xf32>
    tpu.vector_store %arg13[%c16_160, %c32_161], %345 {strides = array<i32>} : memref<64x64xf32, #tpu.memory_space<vmem>>, vector<8x32xf32>,
    %c48_162 = arith.constant 48 : index
    %c0_163 = arith.constant 0 : index
    %347 = vector.load %arg11[%c48_162, %c0_163] : memref<64x256xf32, #tpu.memory_space<vmem>>, vector<8x256xf32>
    %cst_164 = arith.constant dense<0.000000e+00> : vector<8x256xf32>
    %348 = tpu.matmul %342, %212, %cst_164 {dimension_numbers = #tpu.dot_dimension_numbers<[1], [0], [0], [1], [0, 0, 1, 1], [], []>} : vector<8x64xf32>, vector<64x256xf32>, vector<8x256xf32> -> vector<8x256xf32>
    %349 = arith.addf %347, %348 : vector<8x256xf32>
    %350 = arith.negf %349 : vector<8x256xf32>
    %351 = math.exp %350 : vector<8x256xf32>
    %cst_165 = arith.constant 1.000000e+00 : f32
    %352 = vector.broadcast %cst_165 : f32 to vector<8x256xf32>
    %353 = arith.addf %352, %351 : vector<8x256xf32>
    %354 = arith.divf %352, %353 : vector<8x256xf32>
    %355 = math.tanh %349 : vector<8x256xf32>
    %356 = vector.extract_strided_slice %354 {offsets = [0, 0], sizes = [8, 64], strides = [1, 1]} : vector<8x256xf32> to vector<8x64xf32>
    %357 = vector.extract_strided_slice %354 {offsets = [0, 64], sizes = [8, 64], strides = [1, 1]} : vector<8x256xf32> to vector<8x64xf32>
    %358 = vector.extract_strided_slice %354 {offsets = [0, 128], sizes = [8, 64], strides = [1, 1]} : vector<8x256xf32> to vector<8x64xf32>
    %359 = vector.extract_strided_slice %355 {offsets = [0, 192], sizes = [8, 64], strides = [1, 1]} : vector<8x256xf32> to vector<8x64xf32>
    %360 = arith.mulf %357, %340 : vector<8x64xf32>
    %361 = arith.mulf %356, %359 : vector<8x64xf32>
    %362 = arith.addf %360, %361 : vector<8x64xf32>
    %363 = math.tanh %362 : vector<8x64xf32>
    %364 = arith.mulf %358, %363 : vector<8x64xf32>
    %365 = vector.extract_strided_slice %364 {offsets = [0, 0], sizes = [8, 32], strides = [1, 1]} : vector<8x64xf32> to vector<8x32xf32>
    %c48_166 = arith.constant 48 : index
    %c0_167 = arith.constant 0 : index
    %366 = vector.load %arg13[%c48_166, %c0_167] : memref<64x64xf32, #tpu.memory_space<vmem>>, vector<8x32xf32>
    tpu.vector_store %arg13[%c48_166, %c0_167], %365 {strides = array<i32>} : memref<64x64xf32, #tpu.memory_space<vmem>>, vector<8x32xf32>,
    %367 = vector.extract_strided_slice %364 {offsets = [0, 32], sizes = [8, 32], strides = [1, 1]} : vector<8x64xf32> to vector<8x32xf32>
    %c8_168 = arith.constant 8 : index
    %c32_169 = arith.constant 32 : index
    %368 = vector.load %arg13[%c8_168, %c32_169] : memref<64x64xf32, #tpu.memory_space<vmem>>, vector<8x32xf32>
    tpu.vector_store %arg13[%c8_168, %c32_169], %367 {strides = array<i32>} : memref<64x64xf32, #tpu.memory_space<vmem>>, vector<8x32xf32>,
    %c56_170 = arith.constant 56 : index
    %c0_171 = arith.constant 0 : index
    %369 = vector.load %arg11[%c56_170, %c0_171] : memref<64x256xf32, #tpu.memory_space<vmem>>, vector<8x256xf32>
    %cst_172 = arith.constant dense<0.000000e+00> : vector<8x256xf32>
    %370 = tpu.matmul %364, %212, %cst_172 {dimension_numbers = #tpu.dot_dimension_numbers<[1], [0], [0], [1], [0, 0, 1, 1], [], []>} : vector<8x64xf32>, vector<64x256xf32>, vector<8x256xf32> -> vector<8x256xf32>
    %371 = arith.addf %369, %370 : vector<8x256xf32>
    %372 = arith.negf %371 : vector<8x256xf32>
    %373 = math.exp %372 : vector<8x256xf32>
    %cst_173 = arith.constant 1.000000e+00 : f32
    %374 = vector.broadcast %cst_173 : f32 to vector<8x256xf32>
    %375 = arith.addf %374, %373 : vector<8x256xf32>
    %376 = arith.divf %374, %375 : vector<8x256xf32>
    %377 = math.tanh %371 : vector<8x256xf32>
    %378 = vector.extract_strided_slice %376 {offsets = [0, 0], sizes = [8, 64], strides = [1, 1]} : vector<8x256xf32> to vector<8x64xf32>
    %379 = vector.extract_strided_slice %376 {offsets = [0, 64], sizes = [8, 64], strides = [1, 1]} : vector<8x256xf32> to vector<8x64xf32>
    %380 = vector.extract_strided_slice %376 {offsets = [0, 128], sizes = [8, 64], strides = [1, 1]} : vector<8x256xf32> to vector<8x64xf32>
    %381 = vector.extract_strided_slice %377 {offsets = [0, 192], sizes = [8, 64], strides = [1, 1]} : vector<8x256xf32> to vector<8x64xf32>
    %382 = arith.mulf %379, %362 : vector<8x64xf32>
    %383 = arith.mulf %378, %381 : vector<8x64xf32>
    %384 = arith.addf %382, %383 : vector<8x64xf32>
    %385 = math.tanh %384 : vector<8x64xf32>
    %386 = arith.mulf %380, %385 : vector<8x64xf32>
    %387 = vector.extract_strided_slice %386 {offsets = [0, 0], sizes = [8, 32], strides = [1, 1]} : vector<8x64xf32> to vector<8x32xf32>
    %c56_174 = arith.constant 56 : index
    %c0_175 = arith.constant 0 : index
    %388 = vector.load %arg13[%c56_174, %c0_175] : memref<64x64xf32, #tpu.memory_space<vmem>>, vector<8x32xf32>
    tpu.vector_store %arg13[%c56_174, %c0_175], %387 {strides = array<i32>} : memref<64x64xf32, #tpu.memory_space<vmem>>, vector<8x32xf32>,
    %389 = vector.extract_strided_slice %386 {offsets = [0, 32], sizes = [8, 32], strides = [1, 1]} : vector<8x64xf32> to vector<8x32xf32>
    %c0_176 = arith.constant 0 : index
    %c32_177 = arith.constant 32 : index
    %390 = vector.load %arg13[%c0_176, %c32_177] : memref<64x64xf32, #tpu.memory_space<vmem>>, vector<8x32xf32>
    tpu.vector_store %arg13[%c0_176, %c32_177], %389 {strides = array<i32>} : memref<64x64xf32, #tpu.memory_space<vmem>>, vector<8x32xf32>,
    %c1 = arith.constant 1 : index
    %c0_178 = arith.constant 0 : index
    %c0_179 = arith.constant 0 : index
    %391 = vector.load %arg10[%c1, %c0_178, %c0_179] : memref<2x8x64xf32, #tpu.memory_space<vmem>>, vector<1x8x64xf32>
    %392 = vector.shape_cast %391 : vector<1x8x64xf32> to vector<8x64xf32>
    %393 = vector.shape_cast %386 : vector<8x64xf32> to vector<1x8x64xf32>
    tpu.vector_store %arg10[%c1, %c0_178, %c0_179], %393 {strides = array<i32>} : memref<2x8x64xf32, #tpu.memory_space<vmem>>, vector<1x8x64xf32>,
    %c0_180 = arith.constant 0 : index
    %c0_181 = arith.constant 0 : index
    %394 = vector.load %arg13[%c0_180, %c0_181] : memref<64x64xf32, #tpu.memory_space<vmem>>, vector<64x64xf32>
    %c0_182 = arith.constant 0 : index
    %c0_183 = arith.constant 0 : index
    %395 = vector.load %arg7[%c0_182, %c0_183] : memref<64x32xf32, #tpu.memory_space<vmem>>, vector<64x32xf32>
    %cst_184 = arith.constant dense<0.000000e+00> : vector<64x32xf32>
    %396 = tpu.matmul %394, %395, %cst_184 {dimension_numbers = #tpu.dot_dimension_numbers<[1], [0], [0], [1], [0, 0, 1, 1], [], []>} : vector<64x64xf32>, vector<64x32xf32>, vector<64x32xf32> -> vector<64x32xf32>
    %c0_185 = arith.constant 0 : index
    %c0_186 = arith.constant 0 : index
    %397 = vector.load %arg8[%c0_185, %c0_186] : memref<1x32xf32, #tpu.memory_space<vmem>>, vector<1x32xf32>
    %398 = vector.broadcast %397 : vector<1x32xf32> to vector<64x32xf32>
    %399 = arith.addf %396, %398 : vector<64x32xf32>
    %c0_187 = arith.constant 0 : index
    %c0_188 = arith.constant 0 : index
    %400 = vector.load %arg9[%c0_187, %c0_188] : memref<64x32xf32, #tpu.memory_space<vmem>>, vector<64x32xf32>
    tpu.vector_store %arg9[%c0_187, %c0_188], %399 {strides = array<i32>} : memref<64x32xf32, #tpu.memory_space<vmem>>, vector<64x32xf32>,
    return
  }
}

</mosaic_0001>

<bundles_post_ra>
// kernel: bi_lstm_forward.1
= control target key start
LH: loop header
LB: loop body
LE: loop exit
PB: predicated region body
PF: predicated region fallthrough
CT: control target
= control target key end

     0   :  { %v3096_v3 = vmov 0.0   ;;  %vm70_vm0 = vcmask 523264   ;;  %v60_v57 = vlaneseq  ;;  %s3097_s11 = smov 64   ;;  %vm348_vm1 = vcmask 261120   ;;  %s3916_s1 = inlined_call_operand.vmem [shape: f32[64,256], index: 1, kind: input, shape index: {}]   ;;  %s3917_s2 = inlined_call_operand.vmem [shape: f32[64,256], index: 2, kind: input, shape index: {}]   ;;  %s3918_s0 = inlined_call_operand.vmem [shape: f32[64,64], index: 0, kind: input, shape index: {}]   ;;  %s3919_s3 = inlined_call_operand.vmem [shape: f32[1,256], index: 3, kind: input, shape index: {}]   ;;  %s3920_s4 = inlined_call_operand.vmem [shape: f32[128,256], index: 4, kind: input, shape index: {}]   ;;  %s3921_s5 = inlined_call_operand.vmem [shape: f32[64,256], index: 5, kind: input, shape index: {}]   ;;  %s3922_s10 = inlined_call_operand.vmem [shape: f32[2,8,64], index: 10, kind: output, shape index: {1}]   ;;  %s3923_s6 = inlined_call_operand.vmem [shape: f32[1,256], index: 6, kind: input, shape index: {}]   ;;  %s3924_s7 = inlined_call_operand.vmem [shape: f32[64,32], index: 7, kind: input, shape index: {}]   ;;  %s3925_s8 = inlined_call_operand.vmem [shape: f32[1,32], index: 8, kind: input, shape index: {}]   ;;  %s3926_s9 = inlined_call_operand.vmem [shape: f32[64,32], index: 9, kind: output, shape index: {0}]  }
   0x1   :  { %v43_v0 = vld [vmem:[%s3916_s1 + $0x8] sm:$0xff]  ;;  %v45_v1 = vld [vmem:[%s3916_s1 + $0x18] sm:$0xff]  ;;  %v42_v2 = vld [vmem:[%s3916_s1] sm:$0xff]  ;;  %159 = vmatprep.mubr.f32.mxu0 %v3096_v3  ;;  %1282 = vmatprep.mubr.f32.mxu1 %v3096_v3  ;;  %vm350_vm2 = vcmask 523520   ;;  %vm356_vm3 = vcmask 785920   ;;  %vm358_vm4 = vcmask 1048320  }
   0x2   :  { %v2518_v4 = vpack.c.bf16 %v45_v1, %v43_v0  ;;  %v44_v5 = vld [vmem:[%s3916_s1 + $0x10] sm:$0xff]  ;;  %v47_v6 = vld [vmem:[%s3916_s1 + $0x28] sm:$0xff]  ;;  %v49_v7 = vld [vmem:[%s3916_s1 + $0x38] sm:$0xff]  ;;  %v3326_v58 = vshrl.u32 %v60_v57, 7 }
   0x3   :  { %v2520_v8 = vpack.c.bf16 %v44_v5, %v42_v2  ;;  %v2522_v9 = vpack.c.bf16 %v49_v7, %v47_v6  ;;  %v46_v10 = vld [vmem:[%s3916_s1 + $0x20] sm:$0xff]  ;;  %v48_v11 = vld [vmem:[%s3916_s1 + $0x30] sm:$0xff]  ;;  %v51_v12 = vld [vmem:[%s3916_s1 + $0x48] sm:$0xff] }
   0x4   :  { %2519 = vmatprep.subr.bf16.mxu0 %v2518_v4  ;;  %v53_v13 = vld [vmem:[%s3916_s1 + $0x58] sm:$0xff]  ;;  %v2524_v14 = vpack.c.bf16 %v48_v11, %v46_v10  ;;  %v50_v16 = vld [vmem:[%s3916_s1 + $0x40] sm:$0xff]  ;;  %v52_v17 = vld [vmem:[%s3916_s1 + $0x50] sm:$0xff]  ;;  %v66_v59 = vsub.s32 1, %v3326_v58  ;;  %v62_v2 = vsub.s32 0, %v3326_v58 }
   0x5   :  { %2521 = vmatpush1.bf16.msra.mxu0 %v2520_v8  ;;  %v2526_v15 = vpack.c.bf16 %v53_v13, %v51_v12  ;;  %v55_v18 = vld [vmem:[%s3916_s1 + $0x68] sm:$0xff]  ;;  %v57_v19 = vld [vmem:[%s3916_s1 + $0x78] sm:$0xff]  ;;  %v2528_v20 = vpack.c.bf16 %v52_v17, %v50_v16  ;;  %v54_v22 = vld [vmem:[%s3916_s1 + $0x60] sm:$0xff] }
   0x6   :  { %2523 = vmatprep.subr.bf16.mxu0 %v2522_v9  ;;  %v2530_v21 = vpack.c.bf16 %v57_v19, %v55_v18  ;;  %v56_v23 = vld [vmem:[%s3916_s1 + $0x70] sm:$0xff]  ;;  %v225_v24 = vld [vmem:[%s3917_s2 + $0x8] sm:$0xff]  ;;  %v227_v25 = vld [vmem:[%s3917_s2 + $0x18] sm:$0xff] }
   0x7   :  { %v2532_v26 = vpack.c.bf16 %v56_v23, %v54_v22  ;;  %v3209_v27 = vpack.c.bf16 %v227_v25, %v225_v24  ;;  %v224_v28 = vld [vmem:[%s3917_s2] sm:$0xff]  ;;  %v226_v29 = vld [vmem:[%s3917_s2 + $0x10] sm:$0xff]  ;;  %v229_v30 = vld [vmem:[%s3917_s2 + $0x28] sm:$0xff] }
   0x8   :  { %v231_v31 = vld [vmem:[%s3917_s2 + $0x38] sm:$0xff]  ;;  %v34_v32 = vld [vmem:[%s3918_s0] sm:$0xff]  ;;  %v3226_v33 = vpack.c.bf16 %v226_v29, %v224_v28  ;;  %v230_v36 = vld [vmem:[%s3917_s2 + $0x30] sm:$0xff] }
   0x9   :  { %2525 = vmatpush1.bf16.msra.mxu0 %v2524_v14  ;;  %v3229_v34 = vpack.c.bf16 %v231_v31, %v229_v30  ;;  %v228_v35 = vld [vmem:[%s3917_s2 + $0x20] sm:$0xff]  ;;  %v233_v37 = vld [vmem:[%s3917_s2 + $0x48] sm:$0xff]  ;;  %v235_v38 = vld [vmem:[%s3917_s2 + $0x58] sm:$0xff] }
   0xa   :  { %2527 = vmatprep.subr.bf16.mxu0 %v2526_v15  ;;  %v35_v39 = vld [vmem:[%s3918_s0 + $0x8] sm:$0xff]  ;;  %v3249_v40 = vpack.c.bf16 %v230_v36, %v228_v35  ;;  %v3252_v41 = vpack.c.bf16 %v235_v38, %v233_v37  ;;  %v232_v42 = vld [vmem:[%s3917_s2 + $0x40] sm:$0xff]  ;;  %v234_v43 = vld [vmem:[%s3917_s2 + $0x50] sm:$0xff] }
   0xb   :  { %v237_v44 = vld [vmem:[%s3917_s2 + $0x68] sm:$0xff]  ;;  %v239_v45 = vld [vmem:[%s3917_s2 + $0x78] sm:$0xff]  ;;  %v36_v46 = vld [vmem:[%s3918_s0 + $0x10] sm:$0xff]  ;;  %v3272_v47 = vpack.c.bf16 %v234_v43, %v232_v42 }
   0xc   :  { %v3275_v48 = vpack.c.bf16 %v239_v45, %v237_v44  ;;  %v236_v49 = vld [vmem:[%s3917_s2 + $0x60] sm:$0xff]  ;;  %v238_v50 = vld [vmem:[%s3917_s2 + $0x70] sm:$0xff]  ;;  %v37_v51 = vld [vmem:[%s3918_s0 + $0x18] sm:$0xff] }
   0xd   :  { %2529 = vmatpush1.bf16.msra.mxu0 %v2528_v20  ;;  %v3289_v52 = vpack.c.bf16 %v238_v50, %v236_v49  ;;  %v38_v53 = vld [vmem:[%s3918_s0 + $0x20] sm:$0xff]  ;;  %v39_v54 = vld [vmem:[%s3918_s0 + $0x28] sm:$0xff]  ;;  %v40_v55 = vld [vmem:[%s3918_s0 + $0x30] sm:$0xff] }
   0xe   :  { %2531 = vmatprep.subr.bf16.mxu0 %v2530_v21  ;;  %v41_v56 = vld [vmem:[%s3918_s0 + $0x38] sm:$0xff]  ;;  %v58_v60 = vld [vmem:[%s3919_s3] sm:$0x3] }
   0xf   :  { %v3334_v61 = vrot.slane %v58_v60, %v66_v59  ;;  %v3341_v4 = vrot.slane %v58_v60, %v62_v2 }
  0x11   :  { %2533 = vmatpush1.bf16.msra.mxu0 %v2532_v26 }
  0x12   :  { %2535 = vmatprep.subr.bf16.mxu0 %v3209_v27 }
  0x14   :  { %2410 = vmatmul.mubr.msk.f32.vlgmr.msra.gmra.mrb[0].mxu0 %vm70_vm0, %v34_v32 }
  0x15   :  { %2537 = vmatpush1.bf16.msra.mxu0 %v3226_v33  ;;  %165 = vmatprep.mubr.f32.mxu0 %v3096_v3 }
  0x16   :  { %2539 = vmatprep.subr.bf16.mxu0 %v3229_v34 }
  0x18   :  { %2411 = vmatmul.mubr.msk.f32.gmra.mrb[2].mxu0 %vm70_vm0, %v35_v39 }
  0x19   :  { %171 = vmatprep.mubr.f32.mxu0 %v3096_v3  ;;  %2541 = vmatpush1.bf16.msra.mxu0 %v3249_v40 }
  0x1a   :  { %2543 = vmatprep.subr.bf16.mxu0 %v3252_v41 }
  0x1c   :  { %2412 = vmatmul.mubr.msk.f32.gmra.mrb[4].mxu0 %vm70_vm0, %v36_v46 }
  0x1d   :  { %177 = vmatprep.mubr.f32.mxu0 %v3096_v3  ;;  %2545 = vmatpush1.bf16.msra.mxu0 %v3272_v47 }
  0x1e   :  { %2547 = vmatprep.subr.bf16.mxu0 %v3275_v48 }
  0x20   :  { %2413 = vmatmul.mubr.msk.f32.gmra.mrb[6].mxu0 %vm70_vm0, %v37_v51 }
  0x21   :  { %183 = vmatprep.mubr.f32.mxu0 %v3096_v3  ;;  %2549 = vmatpush1.bf16.msra.mxu0 %v3289_v52 }
  0x22   :  { %2551 = vmatprep.subr.bf16.mxu0 %v3209_v27 }
  0x24   :  { %2414 = vmatmul.mubr.msk.f32.gmra.mrb[8].mxu0 %vm70_vm0, %v38_v53 }
  0x25   :  { %189 = vmatprep.mubr.f32.mxu0 %v3096_v3 }
  0x28   :  { %2415 = vmatmul.mubr.msk.f32.gmra.mrb[10].mxu0 %vm70_vm0, %v39_v54 }
  0x29   :  { %195 = vmatprep.mubr.f32.mxu0 %v3096_v3 }
  0x2c   :  { %2416 = vmatmul.mubr.msk.f32.gmra.mrb[12].mxu0 %vm70_vm0, %v40_v55 }
  0x2d   :  { %201 = vmatprep.mubr.f32.mxu0 %v3096_v3 }
  0x30   :  { %2417 = vmatmul.mubr.msk.f32.gmra.mrb[14].mxu0 %vm70_vm0, %v41_v56 }
  0x31   :  { %309 = vmatprep.mubr.f32.mxu0 %v3096_v3 }
  0x34   :  { %310 = vmatmul.mubr.f32.vlgmr.msra.gmra.mrb[0].mxu0 %v3096_v3 }
  0x35   :  { %2553 = vmatpush1.bf16.msra.mxu0 %v3226_v33  ;;  %428 = vmatprep.mubr.f32.mxu0 %v3096_v3 }
  0x36   :  { %2555 = vmatprep.subr.bf16.mxu0 %v3229_v34 }
  0x39   :  { %2557 = vmatpush1.bf16.msra.mxu0 %v3249_v40 }
  0x3a   :  { %2559 = vmatprep.subr.bf16.mxu0 %v3252_v41 }
  0x3d   :  { %2561 = vmatpush1.bf16.msra.mxu0 %v3272_v47 }
  0x3e   :  { %2563 = vmatprep.subr.bf16.mxu0 %v3275_v48 }
  0x41   :  { %2565 = vmatpush1.bf16.msra.mxu0 %v3289_v52 }
  0x42   :  { %2567 = vmatprep.subr.bf16.mxu0 %v3209_v27 }
 0x107   :  { %v311_v62 = vpop.f32.mrb[0].mxu0 }
 0x108   :  { %v313_v63 = vpop.f32.mrb[1].mxu0  ;;  %v2838_v5 = vadd.f32 %v311_v62, %v3341_v4 }
 0x109   :  { %v2839_v0 = vadd.f32 %v313_v63, %v3334_v61 }
 0x10a   :  { %v2418_v6 = vmul.f32 -1.442695, %v2838_v5 }
 0x10b   :  { %2904 = vtanh.f32 %v2839_v0  ;;  %v2419_v16 = vmul.f32 -1.442695, %v2839_v0 }
 0x10c   :  { %2906 = vpow2.f32 %v2418_v6 }
 0x115   :  { %v2905_v1 = vpop.eup %2904 }
 0x116   :  { %333 = vrot.lane.b32.xlu0 %v2905_v1, %s3097_s11  ;;  %v2907_v7 = vpop.eup %2906 }
 0x117   :  { %v324_v8 = vadd.f32 1.0, %v2907_v7 }
 0x119   :  { %2908 = vrcp.f32 %v324_v8 }
 0x123   :  { %v2909_v9 = vpop.eup %2908 }
 0x124   :  { %v331_v12 = vmul.f32 0.0, %v2909_v9 }
 0x188   :  { %v334_v10 = vpop.permute.xlu0 %333 }
 0x189   :  { %v336_v11 = vmul.f32 %v2909_v9, %v334_v10 }
 0x18b   :  { %338 = vrot.lane.b32.xlu0 %v336_v11, %s3097_s11 }
 0x1fd   :  { %v339_v13 = vpop.permute.xlu0 %338 }
 0x1fe   :  { %v341_v14 = vadd.f32 %v339_v13, %v331_v12 }
 0x200   :  { %2910 = vtanh.f32 %v341_v14 }
 0x201   :  { %2912 = vpow2.f32 %v2419_v16 }
 0x20a   :  { %v2911_v15 = vpop.eup %2910 }
 0x20b   :  { %344 = vrot.lane.b32.xlu1 %v2911_v15, %s3097_s11  ;;  %v2913_v17 = vpop.eup %2912 }
 0x20c   :  { %v325_v18 = vadd.f32 1.0, %v2913_v17 }
 0x20e   :  { %2914 = vrcp.f32 %v325_v18 }
 0x218   :  { %v2915_v19 = vpop.eup %2914 }
 0x27d   :  { %v345_v20 = vpop.permute.xlu1 %344 }
 0x27e   :  { %v3346_v21 = vmul.f32 %v2915_v19, %v345_v20 }
 0x280   :  { %2420 = vmatmul.mubr.msk.f32.vlgmr.msra.gmra.mrb[2].mxu0 %vm70_vm0, %v3346_v21  ;;  %349 = vst.msk [vmem:[#allocation3] sm:$0xff] %vm348_vm1, %v3346_v21 }
 0x281   :  { %351 = vst.msk [vmem:[#allocation3 + $0x38] sm:$0xff] %vm350_vm2, %v3346_v21  ;;  %2569 = vmatpush1.bf16.msra.mxu0 %v3226_v33  ;;  %543 = vmatprep.mubr.f32.mxu0 %v3096_v3 }
 0x282   :  { %2571 = vmatprep.subr.bf16.mxu0 %v3229_v34 }
 0x285   :  { %2573 = vmatpush1.bf16.msra.mxu0 %v3249_v40 }
 0x286   :  { %2575 = vmatprep.subr.bf16.mxu0 %v3252_v41 }
 0x289   :  { %2577 = vmatpush1.bf16.msra.mxu0 %v3272_v47 }
 0x28a   :  { %2579 = vmatprep.subr.bf16.mxu0 %v3275_v48 }
 0x28d   :  { %2581 = vmatpush1.bf16.msra.mxu0 %v3289_v52 }
 0x28e   :  { %2583 = vmatprep.subr.bf16.mxu0 %v3209_v27 }
 0x353   :  { %v430_v22 = vpop.f32.mrb[2].mxu0 }
 0x354   :  { %v432_v23 = vpop.f32.mrb[3].mxu0  ;;  %v2840_v26 = vadd.f32 %v430_v22, %v3341_v4 }
 0x355   :  { %v2841_v24 = vadd.f32 %v432_v23, %v3334_v61 }
 0x356   :  { %v2421_v28 = vmul.f32 -1.442695, %v2840_v26 }
 0x357   :  { %2916 = vtanh.f32 %v2841_v24  ;;  %v2422_v42 = vmul.f32 -1.442695, %v2841_v24 }
 0x358   :  { %2918 = vpow2.f32 %v2421_v28 }
 0x361   :  { %v2917_v25 = vpop.eup %2916 }
 0x362   :  { %452 = vrot.lane.b32.xlu1 %v2917_v25, %s3097_s11  ;;  %v2919_v29 = vpop.eup %2918 }
 0x363   :  { %v443_v30 = vadd.f32 1.0, %v2919_v29 }
 0x365   :  { %2920 = vrcp.f32 %v443_v30 }
 0x36f   :  { %v2921_v31 = vpop.eup %2920 }
 0x370   :  { %v450_v36 = vmul.f32 %v2921_v31, %v341_v14 }
 0x3d4   :  { %v453_v32 = vpop.permute.xlu1 %452 }
 0x3d5   :  { %v455_v35 = vmul.f32 %v2921_v31, %v453_v32 }
 0x3d7   :  { %457 = vrot.lane.b32.xlu0 %v455_v35, %s3097_s11 }
 0x449   :  { %v458_v37 = vpop.permute.xlu0 %457 }
 0x44a   :  { %v460_v38 = vadd.f32 %v458_v37, %v450_v36 }
 0x44c   :  { %2922 = vtanh.f32 %v460_v38 }
 0x44d   :  { %2924 = vpow2.f32 %v2422_v42 }
 0x456   :  { %v2923_v39 = vpop.eup %2922 }
 0x457   :  { %463 = vrot.lane.b32.xlu1 %v2923_v39, %s3097_s11  ;;  %v2925_v43 = vpop.eup %2924 }
 0x458   :  { %v444_v44 = vadd.f32 1.0, %v2925_v43 }
 0x45a   :  { %2926 = vrcp.f32 %v444_v44 }
 0x464   :  { %v2927_v45 = vpop.eup %2926 }
 0x4c9   :  { %v464_v46 = vpop.permute.xlu1 %463 }
 0x4ca   :  { %v3368_v49 = vmul.f32 %v2927_v45, %v464_v46 }
 0x4cc   :  { %2423 = vmatmul.mubr.msk.f32.vlgmr.msra.gmra.mrb[4].mxu0 %vm70_vm0, %v3368_v49  ;;  %467 = vst.msk [vmem:[#allocation3 + $0x8] sm:$0xff] %vm348_vm1, %v3368_v49 }
 0x4cd   :  { %468 = vst.msk [vmem:[#allocation3 + $0x30] sm:$0xff] %vm350_vm2, %v3368_v49  ;;  %2585 = vmatpush1.bf16.msra.mxu0 %v3226_v33  ;;  %658 = vmatprep.mubr.f32.mxu0 %v3096_v3 }
 0x4ce   :  { %2587 = vmatprep.subr.bf16.mxu0 %v3229_v34 }
 0x4d1   :  { %2589 = vmatpush1.bf16.msra.mxu0 %v3249_v40 }
 0x4d2   :  { %2591 = vmatprep.subr.bf16.mxu0 %v3252_v41 }
 0x4d5   :  { %2593 = vmatpush1.bf16.msra.mxu0 %v3272_v47 }
 0x4d6   :  { %2595 = vmatprep.subr.bf16.mxu0 %v3275_v48 }
 0x4d9   :  { %2597 = vmatpush1.bf16.msra.mxu0 %v3289_v52 }
 0x4da   :  { %2599 = vmatprep.subr.bf16.mxu0 %v3209_v27 }
 0x59f   :  { %v545_v50 = vpop.f32.mrb[4].mxu0 }
 0x5a0   :  { %v547_v51 = vpop.f32.mrb[5].mxu0  ;;  %v2842_v55 = vadd.f32 %v545_v50, %v3341_v4 }
 0x5a1   :  { %v2843_v53 = vadd.f32 %v547_v51, %v3334_v61 }
 0x5a2   :  { %v2424_v56 = vmul.f32 -1.442695, %v2842_v55 }
 0x5a3   :  { %2928 = vtanh.f32 %v2843_v53  ;;  %v2425_v8 = vmul.f32 -1.442695, %v2843_v53 }
 0x5a4   :  { %2930 = vpow2.f32 %v2424_v56 }
 0x5ad   :  { %v2929_v54 = vpop.eup %2928 }
 0x5ae   :  { %567 = vrot.lane.b32.xlu0 %v2929_v54, %s3097_s11  ;;  %v2931_v57 = vpop.eup %2930 }
 0x5af   :  { %v558_v60 = vadd.f32 1.0, %v2931_v57 }
 0x5b1   :  { %2932 = vrcp.f32 %v558_v60 }
 0x5bb   :  { %v2933_v62 = vpop.eup %2932 }
 0x5bc   :  { %v565_v1 = vmul.f32 %v2933_v62, %v460_v38 }
 0x620   :  { %v568_v63 = vpop.permute.xlu0 %567 }
 0x621   :  { %v570_v0 = vmul.f32 %v2933_v62, %v568_v63 }
 0x623   :  { %572 = vrot.lane.b32.xlu1 %v570_v0, %s3097_s11 }
 0x695   :  { %v573_v5 = vpop.permute.xlu1 %572 }
 0x696   :  { %v575_v6 = vadd.f32 %v573_v5, %v565_v1 }
 0x698   :  { %2934 = vtanh.f32 %v575_v6 }
 0x699   :  { %2936 = vpow2.f32 %v2425_v8 }
 0x6a2   :  { %v2935_v7 = vpop.eup %2934 }
 0x6a3   :  { %578 = vrot.lane.b32.xlu0 %v2935_v7, %s3097_s11  ;;  %v2937_v9 = vpop.eup %2936 }
 0x6a4   :  { %v559_v10 = vadd.f32 1.0, %v2937_v9 }
 0x6a6   :  { %2938 = vrcp.f32 %v559_v10 }
 0x6b0   :  { %v2939_v11 = vpop.eup %2938 }
 0x715   :  { %v579_v12 = vpop.permute.xlu0 %578 }
 0x716   :  { %v3390_v13 = vmul.f32 %v2939_v11, %v579_v12 }
 0x718   :  { %2426 = vmatmul.mubr.msk.f32.vlgmr.msra.gmra.mrb[6].mxu0 %vm70_vm0, %v3390_v13  ;;  %582 = vst.msk [vmem:[#allocation3 + $0x10] sm:$0xff] %vm348_vm1, %v3390_v13 }
 0x719   :  { %583 = vst.msk [vmem:[#allocation3 + $0x28] sm:$0xff] %vm350_vm2, %v3390_v13  ;;  %2601 = vmatpush1.bf16.msra.mxu0 %v3226_v33  ;;  %773 = vmatprep.mubr.f32.mxu0 %v3096_v3 }
 0x71a   :  { %2603 = vmatprep.subr.bf16.mxu0 %v3229_v34 }
 0x71d   :  { %2605 = vmatpush1.bf16.msra.mxu0 %v3249_v40 }
 0x71e   :  { %2607 = vmatprep.subr.bf16.mxu0 %v3252_v41 }
 0x721   :  { %2609 = vmatpush1.bf16.msra.mxu0 %v3272_v47 }
 0x722   :  { %2611 = vmatprep.subr.bf16.mxu0 %v3275_v48 }
 0x725   :  { %2613 = vmatpush1.bf16.msra.mxu0 %v3289_v52 }
 0x726   :  { %2615 = vmatprep.subr.bf16.mxu0 %v3209_v27 }
 0x7eb   :  { %v660_v14 = vpop.f32.mrb[6].mxu0 }
 0x7ec   :  { %v662_v15 = vpop.f32.mrb[7].mxu0  ;;  %v2844_v18 = vadd.f32 %v660_v14, %v3341_v4 }
 0x7ed   :  { %v2845_v16 = vadd.f32 %v662_v15, %v3334_v61 }
 0x7ee   :  { %v2427_v19 = vmul.f32 -1.442695, %v2844_v18 }
 0x7ef   :  { %2940 = vtanh.f32 %v2845_v16  ;;  %v2428_v31 = vmul.f32 -1.442695, %v2845_v16 }
 0x7f0   :  { %2942 = vpow2.f32 %v2427_v19 }
 0x7f9   :  { %v2941_v17 = vpop.eup %2940 }
 0x7fa   :  { %682 = vrot.lane.b32.xlu1 %v2941_v17, %s3097_s11  ;;  %v2943_v20 = vpop.eup %2942 }
 0x7fb   :  { %v673_v22 = vadd.f32 1.0, %v2943_v20 }
 0x7fd   :  { %2944 = vrcp.f32 %v673_v22 }
 0x807   :  { %v2945_v23 = vpop.eup %2944 }
 0x808   :  { %v680_v26 = vmul.f32 %v2945_v23, %v575_v6 }
 0x86c   :  { %v683_v24 = vpop.permute.xlu1 %682 }
 0x86d   :  { %v685_v25 = vmul.f32 %v2945_v23, %v683_v24 }
 0x86f   :  { %687 = vrot.lane.b32.xlu0 %v685_v25, %s3097_s11 }
 0x8e1   :  { %v688_v28 = vpop.permute.xlu0 %687 }
 0x8e2   :  { %v690_v29 = vadd.f32 %v688_v28, %v680_v26 }
 0x8e4   :  { %2946 = vtanh.f32 %v690_v29 }
 0x8e5   :  { %2948 = vpow2.f32 %v2428_v31 }
 0x8ee   :  { %v2947_v30 = vpop.eup %2946 }
 0x8ef   :  { %693 = vrot.lane.b32.xlu1 %v2947_v30, %s3097_s11  ;;  %v2949_v32 = vpop.eup %2948 }
 0x8f0   :  { %v674_v35 = vadd.f32 1.0, %v2949_v32 }
 0x8f2   :  { %2950 = vrcp.f32 %v674_v35 }
 0x8fc   :  { %v2951_v36 = vpop.eup %2950 }
 0x961   :  { %v694_v37 = vpop.permute.xlu1 %693 }
 0x962   :  { %v3412_v38 = vmul.f32 %v2951_v36, %v694_v37 }
 0x964   :  { %2429 = vmatmul.mubr.msk.f32.vlgmr.msra.gmra.mrb[8].mxu0 %vm70_vm0, %v3412_v38  ;;  %697 = vst.msk [vmem:[#allocation3 + $0x18] sm:$0xff] %vm348_vm1, %v3412_v38 }
 0x965   :  { %698 = vst.msk [vmem:[#allocation3 + $0x20] sm:$0xff] %vm350_vm2, %v3412_v38  ;;  %2617 = vmatpush1.bf16.msra.mxu0 %v3226_v33  ;;  %888 = vmatprep.mubr.f32.mxu0 %v3096_v3 }
 0x966   :  { %2619 = vmatprep.subr.bf16.mxu0 %v3229_v34 }
 0x969   :  { %2621 = vmatpush1.bf16.msra.mxu0 %v3249_v40 }
 0x96a   :  { %2623 = vmatprep.subr.bf16.mxu0 %v3252_v41 }
 0x96d   :  { %2625 = vmatpush1.bf16.msra.mxu0 %v3272_v47 }
 0x96e   :  { %2627 = vmatprep.subr.bf16.mxu0 %v3275_v48 }
 0x971   :  { %2629 = vmatpush1.bf16.msra.mxu0 %v3289_v52 }
 0x972   :  { %2631 = vmatprep.subr.bf16.mxu0 %v3209_v27 }
 0xa37   :  { %v775_v39 = vpop.f32.mrb[8].mxu0 }
 0xa38   :  { %v777_v42 = vpop.f32.mrb[9].mxu0  ;;  %v2846_v45 = vadd.f32 %v775_v39, %v3341_v4 }
 0xa39   :  { %v2847_v43 = vadd.f32 %v777_v42, %v3334_v61 }
 0xa3a   :  { %v2430_v46 = vmul.f32 -1.442695, %v2846_v45 }
 0xa3b   :  { %2952 = vtanh.f32 %v2847_v43  ;;  %v2431_v63 = vmul.f32 -1.442695, %v2847_v43 }
 0xa3c   :  { %2954 = vpow2.f32 %v2430_v46 }
 0xa45   :  { %v2953_v44 = vpop.eup %2952 }
 0xa46   :  { %797 = vrot.lane.b32.xlu0 %v2953_v44, %s3097_s11  ;;  %v2955_v50 = vpop.eup %2954 }
 0xa47   :  { %v788_v51 = vadd.f32 1.0, %v2955_v50 }
 0xa49   :  { %2956 = vrcp.f32 %v788_v51 }
 0xa53   :  { %v2957_v53 = vpop.eup %2956 }
 0xa54   :  { %v795_v56 = vmul.f32 %v2957_v53, %v690_v29 }
 0xab8   :  { %v798_v54 = vpop.permute.xlu0 %797 }
 0xab9   :  { %v800_v55 = vmul.f32 %v2957_v53, %v798_v54 }
 0xabb   :  { %802 = vrot.lane.b32.xlu1 %v800_v55, %s3097_s11 }
 0xb2d   :  { %v803_v57 = vpop.permute.xlu1 %802 }
 0xb2e   :  { %v805_v60 = vadd.f32 %v803_v57, %v795_v56 }
 0xb30   :  { %2958 = vtanh.f32 %v805_v60 }
 0xb31   :  { %2960 = vpow2.f32 %v2431_v63 }
 0xb3a   :  { %v2959_v62 = vpop.eup %2958 }
 0xb3b   :  { %808 = vrot.lane.b32.xlu0 %v2959_v62, %s3097_s11  ;;  %v2961_v0 = vpop.eup %2960 }
 0xb3c   :  { %v789_v1 = vadd.f32 1.0, %v2961_v0 }
 0xb3e   :  { %2962 = vrcp.f32 %v789_v1 }
 0xb48   :  { %v2963_v5 = vpop.eup %2962 }
 0xbad   :  { %v809_v6 = vpop.permute.xlu0 %808 }
 0xbae   :  { %v3434_v7 = vmul.f32 %v2963_v5, %v809_v6 }
 0xbb0   :  { %2432 = vmatmul.mubr.msk.f32.vlgmr.msra.gmra.mrb[10].mxu0 %vm70_vm0, %v3434_v7 }
 0xbb1   :  { %2633 = vmatpush1.bf16.msra.mxu0 %v3226_v33  ;;  %1003 = vmatprep.mubr.f32.mxu0 %v3096_v3 }
 0xbb2   :  { %2635 = vmatprep.subr.bf16.mxu0 %v3229_v34 }
 0xbb5   :  { %2637 = vmatpush1.bf16.msra.mxu0 %v3249_v40 }
 0xbb6   :  { %2639 = vmatprep.subr.bf16.mxu0 %v3252_v41 }
 0xbb9   :  { %2641 = vmatpush1.bf16.msra.mxu0 %v3272_v47 }
 0xbba   :  { %2643 = vmatprep.subr.bf16.mxu0 %v3275_v48 }
 0xbbd   :  { %2645 = vmatpush1.bf16.msra.mxu0 %v3289_v52 }
 0xbbe   :  { %2647 = vmatprep.subr.bf16.mxu0 %v3209_v27 }
 0xc83   :  { %v890_v8 = vpop.f32.mrb[10].mxu0 }
 0xc84   :  { %v892_v9 = vpop.f32.mrb[11].mxu0  ;;  %v2848_v12 = vadd.f32 %v890_v8, %v3341_v4 }
 0xc85   :  { %v2849_v10 = vadd.f32 %v892_v9, %v3334_v61 }
 0xc86   :  { %v2433_v14 = vmul.f32 -1.442695, %v2848_v12  ;;  %v1174_v12 = vld [vmem:[%s3920_s4] sm:$0xff] }
 0xc87   :  { %2964 = vtanh.f32 %v2849_v10  ;;  %v2434_v24 = vmul.f32 -1.442695, %v2849_v10  ;;  %v1175_v10 = vld [vmem:[%s3920_s4 + $0x8] sm:$0xff] }
 0xc88   :  { %2966 = vpow2.f32 %v2433_v14 }
 0xc91   :  { %v2965_v11 = vpop.eup %2964 }
 0xc92   :  { %912 = vrot.lane.b32.xlu1 %v2965_v11, %s3097_s11  ;;  %v2967_v15 = vpop.eup %2966  ;;  %v1177_v11 = vld [vmem:[%s3920_s4 + $0x18] sm:$0xff] }
 0xc93   :  { %v903_v16 = vadd.f32 1.0, %v2967_v15  ;;  %v2662_v14 = vpack.c.bf16 %v1177_v11, %v1175_v10  ;;  %v1176_v15 = vld [vmem:[%s3920_s4 + $0x10] sm:$0xff]  ;;  %v1347_v11 = vld [vmem:[%s3921_s5] sm:$0xff] }
 0xc95   :  { %2968 = vrcp.f32 %v903_v16  ;;  %v1179_v16 = vld [vmem:[%s3920_s4 + $0x28] sm:$0xff]  ;;  %2663 = vmatprep.subr.bf16.mxu1 %v2662_v14 }
 0xc9f   :  { %v2969_v17 = vpop.eup %2968 }
 0xca0   :  { %v910_v27 = vmul.f32 %v2969_v17, %v805_v60 }
 0xd04   :  { %v913_v18 = vpop.permute.xlu1 %912 }
 0xd05   :  { %v915_v19 = vmul.f32 %v2969_v17, %v913_v18  ;;  %v1181_v17 = vld [vmem:[%s3920_s4 + $0x38] sm:$0xff]  ;;  %v2664_v18 = vpack.c.bf16 %v1176_v15, %v1174_v12  ;;  %v1349_v12 = vld [vmem:[%s3921_s5 + $0x10] sm:$0xff] }
 0xd06   :  { %v3644_v14 = vpack.c.bf16 %v1349_v12, %v1347_v11 }
 0xd07   :  { %917 = vrot.lane.b32.xlu0 %v915_v19, %s3097_s11  ;;  %v2666_v19 = vpack.c.bf16 %v1181_v17, %v1179_v16  ;;  %2665 = vmatpush1.bf16.msra.mxu1 %v2664_v18  ;;  %v1351_v16 = vld [vmem:[%s3921_s5 + $0x20] sm:$0xff]  ;;  %v1353_v17 = vld [vmem:[%s3921_s5 + $0x30] sm:$0xff] }
 0xd09   :  { %2667 = vmatprep.subr.bf16.mxu1 %v2666_v19 }
 0xd79   :  { %v918_v20 = vpop.permute.xlu0 %917 }
 0xd7a   :  { %v920_v22 = vadd.f32 %v918_v20, %v910_v27  ;;  %v1178_v27 = vld [vmem:[%s3920_s4 + $0x20] sm:$0xff]  ;;  %v1180_v20 = vld [vmem:[%s3920_s4 + $0x30] sm:$0xff] }
 0xd7c   :  { %2970 = vtanh.f32 %v920_v22 }
 0xd7d   :  { %2972 = vpow2.f32 %v2434_v24  ;;  %v2668_v24 = vpack.c.bf16 %v1180_v20, %v1178_v27  ;;  %v1356_v27 = vld [vmem:[%s3921_s5 + $0x48] sm:$0xff]  ;;  %v1358_v20 = vld [vmem:[%s3921_s5 + $0x58] sm:$0xff] }
 0xd7f   :  { %2669 = vmatpush1.bf16.msra.mxu1 %v2668_v24  ;;  %v1355_v24 = vld [vmem:[%s3921_s5 + $0x40] sm:$0xff] }
 0xd86   :  { %v2971_v23 = vpop.eup %2970 }
 0xd87   :  { %923 = vrot.lane.b32.xlu1 %v2971_v23, %s3097_s11  ;;  %v2973_v25 = vpop.eup %2972  ;;  %v1185_v23 = vld [vmem:[%s3920_s4 + $0x58] sm:$0xff] }
 0xd88   :  { %v904_v26 = vadd.f32 1.0, %v2973_v25 }
 0xd8a   :  { %2974 = vrcp.f32 %v904_v26  ;;  %v1182_v26 = vld [vmem:[%s3920_s4 + $0x40] sm:$0xff] }
 0xd94   :  { %v2975_v28 = vpop.eup %2974 }
 0xdf9   :  { %v924_v29 = vpop.permute.xlu1 %923 }
 0xdfa   :  { %v3452_v30 = vmul.f32 %v2975_v28, %v924_v29  ;;  %v1184_v28 = vld [vmem:[%s3920_s4 + $0x50] sm:$0xff]  ;;  %v1187_v29 = vld [vmem:[%s3920_s4 + $0x68] sm:$0xff] }
 0xdfc   :  { %2435 = vmatmul.mubr.msk.f32.vlgmr.msra.gmra.mrb[12].mxu0 %vm70_vm0, %v3452_v30 }
 0xdfd   :  { %2649 = vmatpush1.bf16.msra.mxu0 %v3226_v33  ;;  %1118 = vmatprep.mubr.f32.mxu0 %v3096_v3 }
 0xdfe   :  { %2651 = vmatprep.subr.bf16.mxu0 %v3229_v34 }
 0xe01   :  { %2653 = vmatpush1.bf16.msra.mxu0 %v3249_v40 }
 0xe02   :  { %2655 = vmatprep.subr.bf16.mxu0 %v3252_v41 }
 0xe05   :  { %2657 = vmatpush1.bf16.msra.mxu0 %v3272_v47 }
 0xe06   :  { %2659 = vmatprep.subr.bf16.mxu0 %v3275_v48 }
 0xe09   :  { %2661 = vmatpush1.bf16.msra.mxu0 %v3289_v52 }
 0xecf   :  { %v1005_v31 = vpop.f32.mrb[12].mxu0 }
 0xed0   :  { %v1007_v32 = vpop.f32.mrb[13].mxu0  ;;  %v2850_v34 = vadd.f32 %v1005_v31, %v3341_v4  ;;  %v1189_v31 = vld [vmem:[%s3920_s4 + $0x78] sm:$0xff] }
 0xed1   :  { %v2851_v35 = vadd.f32 %v1007_v32, %v3334_v61  ;;  %v2672_v32 = vpack.c.bf16 %v1184_v28, %v1182_v26 }
 0xed2   :  { %v2436_v36 = vmul.f32 -1.442695, %v2850_v34  ;;  %v1188_v34 = vld [vmem:[%s3920_s4 + $0x70] sm:$0xff] }
 0xed3   :  { %2976 = vtanh.f32 %v2851_v35  ;;  %v2437_v44 = vmul.f32 -1.442695, %v2851_v35  ;;  %v2674_v35 = vpack.c.bf16 %v1189_v31, %v1187_v29  ;;  %v1360_v29 = vld [vmem:[%s3921_s5 + $0x68] sm:$0xff]  ;;  %v1362_v31 = vld [vmem:[%s3921_s5 + $0x78] sm:$0xff] }
 0xed4   :  { %2978 = vpow2.f32 %v2436_v36  ;;  %v1191_v36 = vld [vmem:[%s3920_s4 + $0x88] sm:$0xff] }
 0xedd   :  { %v2977_v33 = vpop.eup %2976 }
 0xede   :  { %1027 = vrot.lane.b32.xlu0 %v2977_v33, %s3097_s11  ;;  %v2979_v40 = vpop.eup %2978  ;;  %v1186_v33 = vld [vmem:[%s3920_s4 + $0x60] sm:$0xff] }
 0xedf   :  { %v1018_v41 = vadd.f32 1.0, %v2979_v40  ;;  %v1193_v40 = vld [vmem:[%s3920_s4 + $0x98] sm:$0xff] }
 0xee1   :  { %2980 = vrcp.f32 %v1018_v41  ;;  %v2676_v41 = vpack.c.bf16 %v1188_v34, %v1186_v33  ;;  %v1359_v33 = vld [vmem:[%s3921_s5 + $0x60] sm:$0xff]  ;;  %v1361_v34 = vld [vmem:[%s3921_s5 + $0x70] sm:$0xff] }
 0xeeb   :  { %v2981_v47 = vpop.eup %2980 }
 0xeec   :  { %v1025_v52 = vmul.f32 %v2981_v47, %v920_v22  ;;  %v1183_v22 = vld [vmem:[%s3920_s4 + $0x48] sm:$0xff] }
 0xeed   :  { %v2670_v25 = vpack.c.bf16 %v1185_v23, %v1183_v22  ;;  %v3664_v22 = vpack.c.bf16 %v1353_v17, %v1351_v16  ;;  %v3667_v23 = vpack.c.bf16 %v1358_v20, %v1356_v27 }
 0xeef   :  { %2671 = vmatprep.subr.bf16.mxu1 %v2670_v25  ;;  %v1357_v25 = vld [vmem:[%s3921_s5 + $0x50] sm:$0xff] }
 0xef0   :  { %2673 = vmatpush1.bf16.msra.mxu1 %v2672_v32  ;;  %v3685_v32 = vpack.c.bf16 %v1357_v25, %v1355_v24 }
 0xef1   :  { %2675 = vmatprep.subr.bf16.mxu1 %v2674_v35  ;;  %v3688_v35 = vpack.c.bf16 %v1362_v31, %v1360_v29 }
 0xef4   :  { %2677 = vmatpush1.bf16.msra.mxu1 %v2676_v41 }
 0xf50   :  { %v1028_v37 = vpop.permute.xlu0 %1027 }
 0xf51   :  { %v1030_v48 = vmul.f32 %v2981_v47, %v1028_v37  ;;  %v2678_v47 = vpack.c.bf16 %v1193_v40, %v1191_v36  ;;  %v1190_v37 = vld [vmem:[%s3920_s4 + $0x80] sm:$0xff]  ;;  %v3698_v40 = vpack.c.bf16 %v1361_v34, %v1359_v33 }
 0xf53   :  { %1032 = vrot.lane.b32.xlu1 %v1030_v48, %s3097_s11  ;;  %v1192_v48 = vld [vmem:[%s3920_s4 + $0x90] sm:$0xff]  ;;  %2679 = vmatprep.subr.bf16.mxu1 %v2678_v47 }
 0xfc5   :  { %v1033_v39 = vpop.permute.xlu1 %1032 }
 0xfc6   :  { %v1035_v42 = vadd.f32 %v1033_v39, %v1025_v52  ;;  %v1195_v52 = vld [vmem:[%s3920_s4 + $0xa8] sm:$0xff]  ;;  %v1197_v39 = vld [vmem:[%s3920_s4 + $0xb8] sm:$0xff] }
 0xfc8   :  { %2982 = vtanh.f32 %v1035_v42 }
 0xfc9   :  { %2984 = vpow2.f32 %v2437_v44  ;;  %v1194_v44 = vld [vmem:[%s3920_s4 + $0xa0] sm:$0xff] }
 0xfd2   :  { %v2983_v43 = vpop.eup %2982 }
 0xfd3   :  { %1038 = vrot.lane.b32.xlu0 %v2983_v43, %s3097_s11  ;;  %v2985_v45 = vpop.eup %2984  ;;  %v2682_v43 = vpack.c.bf16 %v1197_v39, %v1195_v52  ;;  %v1206_v39 = vld [vmem:[%s3923_s6] sm:$0x3] }
 0xfd4   :  { %v1019_v46 = vadd.f32 1.0, %v2985_v45  ;;  %v1196_v45 = vld [vmem:[%s3920_s4 + $0xb0] sm:$0xff] }
 0xfd6   :  { %2986 = vrcp.f32 %v1019_v46  ;;  %v2684_v46 = vpack.c.bf16 %v1196_v45, %v1194_v44 }
 0xfe0   :  { %v2987_v50 = vpop.eup %2986 }
0x1045   :  { %v1039_v51 = vpop.permute.xlu0 %1038 }
0x1046   :  { %v3469_v53 = vmul.f32 %v2987_v50, %v1039_v51 }
0x1048   :  { %2438 = vmatmul.mubr.msk.f32.vlgmr.msra.gmra.mrb[14].mxu0 %vm70_vm0, %v3469_v53 }
0x111b   :  { %v1120_v54 = vpop.f32.mrb[14].mxu0 }
0x111c   :  { %v1122_v55 = vpop.f32.mrb[15].mxu0  ;;  %v2852_v60 = vadd.f32 %v1120_v54, %v3341_v4 }
0x111d   :  { %v3474_v56 = vadd.f32 %v1122_v55, %v3334_v61  ;;  %v1199_v55 = vld [vmem:[%s3920_s4 + $0xc8] sm:$0xff] }
0x111e   :  { %v2439_v62 = vmul.f32 -1.442695, %v2852_v60 }
0x111f   :  { %2988 = vtanh.f32 %v3474_v56  ;;  %v2440_v50 = vmul.f32 -1.442695, %v3474_v56  ;;  %v1200_v56 = vld [vmem:[%s3920_s4 + $0xd0] sm:$0xff] }
0x1120   :  { %2990 = vpow2.f32 %v2439_v62  ;;  %v1198_v62 = vld [vmem:[%s3920_s4 + $0xc0] sm:$0xff] }
0x1129   :  { %v2989_v57 = vpop.eup %2988 }
0x112a   :  { %1142 = vrot.lane.b32.xlu1 %v2989_v57, %s3097_s11  ;;  %v2991_v63 = vpop.eup %2990  ;;  %v1201_v57 = vld [vmem:[%s3920_s4 + $0xd8] sm:$0xff] }
0x112b   :  { %v1133_v0 = vadd.f32 1.0, %v2991_v63  ;;  %v2686_v60 = vpack.c.bf16 %v1201_v57, %v1199_v55  ;;  %v2688_v63 = vpack.c.bf16 %v1200_v56, %v1198_v62 }
0x112d   :  { %2992 = vrcp.f32 %v1133_v0  ;;  %v1203_v0 = vld [vmem:[%s3920_s4 + $0xe8] sm:$0xff] }
0x1137   :  { %v2993_v1 = vpop.eup %2992 }
0x1138   :  { %v1140_v61 = vmul.f32 %v2993_v1, %v1035_v42  ;;  %v2680_v42 = vpack.c.bf16 %v1192_v48, %v1190_v37 }
0x113a   :  { %2681 = vmatpush1.bf16.msra.mxu1 %v2680_v42  ;;  %v3723_v42 = vrot.slane %v1206_v39, %v66_v59 }
0x113b   :  { %2683 = vmatprep.subr.bf16.mxu1 %v2682_v43 }
0x113e   :  { %2685 = vmatpush1.bf16.msra.mxu1 %v2684_v46 }
0x113f   :  { %2687 = vmatprep.subr.bf16.mxu1 %v2686_v60 }
0x1142   :  { %2689 = vmatpush1.bf16.msra.mxu1 %v2688_v63 }
0x119c   :  { %v1143_v5 = vpop.permute.xlu1 %1142 }
0x119d   :  { %v1145_v6 = vmul.f32 %v2993_v1, %v1143_v5  ;;  %v1205_v1 = vld [vmem:[%s3920_s4 + $0xf8] sm:$0xff] }
0x119e   :  { %v2690_v5 = vpack.c.bf16 %v1205_v1, %v1203_v0 }
0x119f   :  { %1147 = vrot.lane.b32.xlu0 %v1145_v6, %s3097_s11  ;;  %v1202_v6 = vld [vmem:[%s3920_s4 + $0xe0] sm:$0xff] }
0x11a0   :  { %2691 = vmatprep.subr.bf16.mxu1 %v2690_v5 }
0x11a3   :  { %353 = vrot.lane.b32.xlu0 %v3346_v21, %s3097_s11 }
0x11a7   :  { %470 = vrot.lane.b32.xlu0 %v3368_v49, %s3097_s11 }
0x11ab   :  { %585 = vrot.lane.b32.xlu0 %v3390_v13, %s3097_s11 }
0x11af   :  { %700 = vrot.lane.b32.xlu0 %v3412_v38, %s3097_s11 }
0x1211   :  { %v1148_v4 = vpop.permute.xlu0 %1147 }
0x1212   :  { %v1150_v8 = vadd.f32 %v1148_v4, %v1140_v61  ;;  %v1204_v61 = vld [vmem:[%s3920_s4 + $0xf0] sm:$0xff] }
0x1213   :  { %v2692_v4 = vpack.c.bf16 %v1204_v61, %v1202_v6 }
0x1214   :  { %2994 = vtanh.f32 %v1150_v8  ;;  %v1348_v8 = vld [vmem:[%s3921_s5 + $0x8] sm:$0xff] }
0x1215   :  { %v354_v9 = vpop.permute.xlu0 %353  ;;  %2996 = vpow2.f32 %v2440_v50  ;;  %2693 = vmatpush1.bf16.msra.mxu1 %v2692_v4  ;;  %v3729_v50 = vrot.slane %v1206_v39, %v62_v2 }
0x1216   :  { %357 = vst.msk [vmem:[#allocation3 + $0x38] sm:$0xff] %vm356_vm3, %v354_v9 }
0x1217   :  { %359 = vst.msk [vmem:[#allocation3] sm:$0xff] %vm358_vm4, %v354_v9  ;;  %v1350_v9 = vld [vmem:[%s3921_s5 + $0x18] sm:$0xff] }
0x1219   :  { %v471_v21 = vpop.permute.xlu0 %470 }
0x121a   :  { %473 = vst.msk [vmem:[#allocation3 + $0x30] sm:$0xff] %vm356_vm3, %v471_v21 }
0x121b   :  { %474 = vst.msk [vmem:[#allocation3 + $0x8] sm:$0xff] %vm358_vm4, %v471_v21 }
0x121c   :  { %1042 = vst.msk [vmem:[#allocation3 + $0x30] sm:$0xff] %vm348_vm1, %v3469_v53 }
0x121d   :  { %1043 = vst.msk [vmem:[#allocation3 + $0x8] sm:$0xff] %vm350_vm2, %v3469_v53  ;;  %v586_v49 = vpop.permute.xlu0 %585 }
0x121e   :  { %v2995_v13 = vpop.eup %2994  ;;  %588 = vst.msk [vmem:[#allocation3 + $0x28] sm:$0xff] %vm356_vm3, %v586_v49 }
0x121f   :  { %589 = vst.msk [vmem:[#allocation3 + $0x10] sm:$0xff] %vm358_vm4, %v586_v49  ;;  %1153 = vrot.lane.b32.xlu1 %v2995_v13, %s3097_s11  ;;  %v2997_v51 = vpop.eup %2996  ;;  %v3612_v13 = vpack.c.bf16 %v1350_v9, %v1348_v8 }
0x1220   :  { %927 = vst.msk [vmem:[#allocation3 + $0x28] sm:$0xff] %vm348_vm1, %v3452_v30  ;;  %v1134_v54 = vadd.f32 1.0, %v2997_v51 }
0x1221   :  { %928 = vst.msk [vmem:[#allocation3 + $0x10] sm:$0xff] %vm350_vm2, %v3452_v30  ;;  %v701_v38 = vpop.permute.xlu0 %700  ;;  %2695 = vmatprep.subr.bf16.mxu1 %v3612_v13 }
0x1222   :  { %703 = vst.msk [vmem:[#allocation3 + $0x20] sm:$0xff] %vm356_vm3, %v701_v38  ;;  %2998 = vrcp.f32 %v1134_v54 }
0x1223   :  { %704 = vst.msk [vmem:[#allocation3 + $0x18] sm:$0xff] %vm358_vm4, %v701_v38 }
0x1224   :  { %812 = vst.msk [vmem:[#allocation3 + $0x20] sm:$0xff] %vm348_vm1, %v3434_v7 }
0x1225   :  { %813 = vst.msk [vmem:[#allocation3 + $0x18] sm:$0xff] %vm350_vm2, %v3434_v7 }
0x122c   :  { %v2999_v21 = vpop.eup %2998 }
0x1291   :  { %v1154_v49 = vpop.permute.xlu1 %1153 }
0x1292   :  { %v1156_v38 = vmul.f32 %v2999_v21, %v1154_v49 }
0x1294   :  { %1157 = vst.msk [vmem:[#allocation3 + $0x38] sm:$0xff] %vm348_vm1, %v1156_v38  ;;  %1160 = vrot.lane.b32.xlu1 %v1156_v38, %s3097_s11 }
0x1295   :  { %1158 = vst.msk [vmem:[#allocation3] sm:$0xff] %vm350_vm2, %v1156_v38 }
0x1296   :  { %1165 = vst.msk [vmem:[%s3922_s10] sm:$0xff] %vm70_vm0, %v1156_v38 }
0x1298   :  { %1045 = vrot.lane.b32.xlu1 %v3469_v53, %s3097_s11 }
0x129c   :  { %930 = vrot.lane.b32.xlu1 %v3452_v30, %s3097_s11  ;;  %v1352_v30 = vld [vmem:[%s3921_s5 + $0x28] sm:$0xff] }
0x12a0   :  { %815 = vrot.lane.b32.xlu1 %v3434_v7, %s3097_s11  ;;  %v1354_v7 = vld [vmem:[%s3921_s5 + $0x38] sm:$0xff] }
0x12a1   :  { %v3646_v15 = vpack.c.bf16 %v1354_v7, %v1352_v30 }
0x1306   :  { %v1161_v10 = vpop.permute.xlu1 %1160 }
0x1307   :  { %1163 = vst.msk [vmem:[#allocation3] sm:$0xff] %vm356_vm3, %v1161_v10 }
0x1308   :  { %1164 = vst.msk [vmem:[#allocation3 + $0x38] sm:$0xff] %vm358_vm4, %v1161_v10 }
0x130a   :  { %v1046_v53 = vpop.permute.xlu1 %1045 }
0x130b   :  { %1048 = vst.msk [vmem:[#allocation3 + $0x8] sm:$0xff] %vm356_vm3, %v1046_v53 }
0x130c   :  { %1049 = vst.msk [vmem:[#allocation3 + $0x30] sm:$0xff] %vm358_vm4, %v1046_v53 }
0x130e   :  { %v931_v18 = vpop.permute.xlu1 %930  ;;  %v1166_v19 = vld [vmem:[#allocation3] sm:$0xff] }
0x130f   :  { %933 = vst.msk [vmem:[#allocation3 + $0x10] sm:$0xff] %vm356_vm3, %v931_v18  ;;  %1283 = vmatmul.mubr.f32.vlgmr.msra.gmra.mrb[0].mxu1 %v1166_v19  ;;  %v1173_v52 = vld [vmem:[#allocation3 + $0x38] sm:$0xff] }
0x1310   :  { %934 = vst.msk [vmem:[#allocation3 + $0x28] sm:$0xff] %vm358_vm4, %v931_v18  ;;  %2697 = vmatpush1.bf16.msra.mxu1 %v3644_v14  ;;  %1288 = vmatprep.mubr.f32.mxu1 %v3096_v3 }
0x1311   :  { %2699 = vmatprep.subr.bf16.mxu1 %v3646_v15 }
0x1312   :  { %v816_v26 = vpop.permute.xlu1 %815  ;;  %v1167_v28 = vld [vmem:[#allocation3 + $0x8] sm:$0xff] }
0x1313   :  { %818 = vst.msk [vmem:[#allocation3 + $0x18] sm:$0xff] %vm356_vm3, %v816_v26  ;;  %1289 = vmatmul.mubr.f32.gmra.mrb[2].mxu1 %v1167_v28  ;;  %v1172_v48 = vld [vmem:[#allocation3 + $0x30] sm:$0xff] }
0x1314   :  { %819 = vst.msk [vmem:[#allocation3 + $0x20] sm:$0xff] %vm358_vm4, %v816_v26  ;;  %1294 = vmatprep.mubr.f32.mxu1 %v3096_v3  ;;  %2701 = vmatpush1.bf16.msra.mxu1 %v3664_v22 }
0x1315   :  { %2703 = vmatprep.subr.bf16.mxu1 %v3667_v23 }
0x1316   :  { %v1168_v36 = vld [vmem:[#allocation3 + $0x10] sm:$0xff] }
0x1317   :  { %1295 = vmatmul.mubr.f32.gmra.mrb[4].mxu1 %v1168_v36  ;;  %v1171_v37 = vld [vmem:[#allocation3 + $0x28] sm:$0xff] }
0x1318   :  { %1300 = vmatprep.mubr.f32.mxu1 %v3096_v3  ;;  %2705 = vmatpush1.bf16.msra.mxu1 %v3685_v32 }
0x1319   :  { %2707 = vmatprep.subr.bf16.mxu1 %v3688_v35 }
0x131a   :  { %v1169_v41 = vld [vmem:[#allocation3 + $0x18] sm:$0xff] }
0x131b   :  { %1301 = vmatmul.mubr.f32.gmra.mrb[6].mxu1 %v1169_v41  ;;  %v1170_v47 = vld [vmem:[#allocation3 + $0x20] sm:$0xff] }
0x131c   :  { %1306 = vmatprep.mubr.f32.mxu1 %v3096_v3  ;;  %2709 = vmatpush1.bf16.msra.mxu1 %v3698_v40 }
0x131d   :  { %2711 = vmatprep.subr.bf16.mxu1 %v3612_v13 }
0x131f   :  { %1307 = vmatmul.mubr.f32.gmra.mrb[8].mxu1 %v1170_v47 }
0x1320   :  { %1312 = vmatprep.mubr.f32.mxu1 %v3096_v3 }
0x1323   :  { %1313 = vmatmul.mubr.f32.gmra.mrb[10].mxu1 %v1171_v37 }
0x1324   :  { %1318 = vmatprep.mubr.f32.mxu1 %v3096_v3 }
0x1327   :  { %1319 = vmatmul.mubr.f32.gmra.mrb[12].mxu1 %v1172_v48 }
0x1328   :  { %1324 = vmatprep.mubr.f32.mxu1 %v3096_v3 }
0x132b   :  { %1325 = vmatmul.mubr.f32.gmra.mrb[14].mxu1 %v1173_v52 }
0x132c   :  { %1429 = vmatprep.mubr.f32.mxu1 %v3096_v3 }
0x132f   :  { %1430 = vmatmul.mubr.f32.vlgmr.msra.gmra.mrb[0].mxu1 %v3096_v3 }
0x1330   :  { %2713 = vmatpush1.bf16.msra.mxu1 %v3644_v14  ;;  %1539 = vmatprep.mubr.f32.mxu1 %v3096_v3 }
0x1331   :  { %2715 = vmatprep.subr.bf16.mxu1 %v3646_v15 }
0x1334   :  { %2717 = vmatpush1.bf16.msra.mxu1 %v3664_v22 }
0x1335   :  { %2719 = vmatprep.subr.bf16.mxu1 %v3667_v23 }
0x1338   :  { %2721 = vmatpush1.bf16.msra.mxu1 %v3685_v32 }
0x1339   :  { %2723 = vmatprep.subr.bf16.mxu1 %v3688_v35 }
0x133c   :  { %2725 = vmatpush1.bf16.msra.mxu1 %v3698_v40 }
0x133d   :  { %2727 = vmatprep.subr.bf16.mxu1 %v3612_v13 }
0x1402   :  { %v1431_v43 = vpop.f32.mrb[0].mxu1 }
0x1403   :  { %v1433_v44 = vpop.f32.mrb[1].mxu1  ;;  %v2854_v51 = vadd.f32 %v1431_v43, %v3729_v50 }
0x1404   :  { %v2855_v45 = vadd.f32 %v1433_v44, %v3723_v42 }
0x1405   :  { %v2441_v54 = vmul.f32 -1.442695, %v2854_v51 }
0x1406   :  { %3000 = vtanh.f32 %v2855_v45  ;;  %v2442_v58 = vmul.f32 -1.442695, %v2855_v45 }
0x1407   :  { %3002 = vpow2.f32 %v2441_v54 }
0x1410   :  { %v3001_v46 = vpop.eup %3000 }
0x1411   :  { %1453 = vrot.lane.b32.xlu0 %v3001_v46, %s3097_s11  ;;  %v3003_v55 = vpop.eup %3002 }
0x1412   :  { %v1444_v57 = vadd.f32 1.0, %v3003_v55 }
0x1414   :  { %3004 = vrcp.f32 %v1444_v57 }
0x141e   :  { %v3005_v59 = vpop.eup %3004 }
0x141f   :  { %v1451_v56 = vmul.f32 0.0, %v3005_v59 }
0x1483   :  { %v1454_v60 = vpop.permute.xlu0 %1453 }
0x1484   :  { %v1456_v62 = vmul.f32 %v3005_v59, %v1454_v60 }
0x1486   :  { %1458 = vrot.lane.b32.xlu1 %v1456_v62, %s3097_s11 }
0x14f8   :  { %v1459_v63 = vpop.permute.xlu1 %1458 }
0x14f9   :  { %v1461_v0 = vadd.f32 %v1459_v63, %v1451_v56 }
0x14fb   :  { %3006 = vtanh.f32 %v1461_v0 }
0x14fc   :  { %3008 = vpow2.f32 %v2442_v58 }
0x1505   :  { %v3007_v1 = vpop.eup %3006 }
0x1506   :  { %1464 = vrot.lane.b32.xlu0 %v3007_v1, %s3097_s11  ;;  %v3009_v2 = vpop.eup %3008 }
0x1507   :  { %v1445_v5 = vadd.f32 1.0, %v3009_v2 }
0x1509   :  { %3010 = vrcp.f32 %v1445_v5 }
0x1513   :  { %v3011_v6 = vpop.eup %3010 }
0x1578   :  { %v1465_v61 = vpop.permute.xlu0 %1464 }
0x1579   :  { %v1467_v4 = vmul.f32 %v3011_v6, %v1465_v61 }
0x157b   :  { %1468 = vst.msk [vmem:[#allocation4] sm:$0xff] %vm348_vm1, %v1467_v4  ;;  %2443 = vmatmul.mubr.msk.f32.vlgmr.msra.gmra.mrb[2].mxu1 %vm70_vm0, %v1467_v4 }
0x157c   :  { %1469 = vst.msk [vmem:[#allocation4 + $0x38] sm:$0xff] %vm350_vm2, %v1467_v4  ;;  %2729 = vmatpush1.bf16.msra.mxu1 %v3644_v14  ;;  %1649 = vmatprep.mubr.f32.mxu1 %v3096_v3 }
0x157d   :  { %2731 = vmatprep.subr.bf16.mxu1 %v3646_v15 }
0x1580   :  { %2733 = vmatpush1.bf16.msra.mxu1 %v3664_v22 }
0x1581   :  { %2735 = vmatprep.subr.bf16.mxu1 %v3667_v23 }
0x1584   :  { %2737 = vmatpush1.bf16.msra.mxu1 %v3685_v32 }
0x1585   :  { %2739 = vmatprep.subr.bf16.mxu1 %v3688_v35 }
0x1588   :  { %2741 = vmatpush1.bf16.msra.mxu1 %v3698_v40 }
0x1589   :  { %2743 = vmatprep.subr.bf16.mxu1 %v3612_v13 }
0x164e   :  { %v1541_v8 = vpop.f32.mrb[2].mxu1 }
0x164f   :  { %v1543_v9 = vpop.f32.mrb[3].mxu1  ;;  %v2856_v38 = vadd.f32 %v1541_v8, %v3729_v50 }
0x1650   :  { %v2857_v21 = vadd.f32 %v1543_v9, %v3723_v42 }
0x1651   :  { %v2444_v10 = vmul.f32 -1.442695, %v2856_v38 }
0x1652   :  { %3012 = vtanh.f32 %v2857_v21  ;;  %v2445_v27 = vmul.f32 -1.442695, %v2857_v21 }
0x1653   :  { %3014 = vpow2.f32 %v2444_v10 }
0x165c   :  { %v3013_v49 = vpop.eup %3012 }
0x165d   :  { %1563 = vrot.lane.b32.xlu1 %v3013_v49, %s3097_s11  ;;  %v3015_v11 = vpop.eup %3014 }
0x165e   :  { %v1554_v12 = vadd.f32 1.0, %v3015_v11 }
0x1660   :  { %3016 = vrcp.f32 %v1554_v12 }
0x166a   :  { %v3017_v53 = vpop.eup %3016 }
0x166b   :  { %v1561_v16 = vmul.f32 %v3017_v53, %v1461_v0 }
0x16cf   :  { %v1564_v30 = vpop.permute.xlu1 %1563 }
0x16d0   :  { %v1566_v7 = vmul.f32 %v3017_v53, %v1564_v30 }
0x16d2   :  { %1568 = vrot.lane.b32.xlu0 %v1566_v7, %s3097_s11 }
0x1744   :  { %v1569_v17 = vpop.permute.xlu0 %1568 }
0x1745   :  { %v1571_v18 = vadd.f32 %v1569_v17, %v1561_v16 }
0x1747   :  { %3018 = vtanh.f32 %v1571_v18 }
0x1748   :  { %3020 = vpow2.f32 %v2445_v27 }
0x1751   :  { %v3019_v19 = vpop.eup %3018 }
0x1752   :  { %1574 = vrot.lane.b32.xlu1 %v3019_v19, %s3097_s11  ;;  %v3021_v20 = vpop.eup %3020 }
0x1753   :  { %v1555_v24 = vadd.f32 1.0, %v3021_v20 }
0x1755   :  { %3022 = vrcp.f32 %v1555_v24 }
0x175f   :  { %v3023_v25 = vpop.eup %3022 }
0x17c4   :  { %v1575_v26 = vpop.permute.xlu1 %1574 }
0x17c5   :  { %v1577_v28 = vmul.f32 %v3023_v25, %v1575_v26 }
0x17c7   :  { %1578 = vst.msk [vmem:[#allocation4 + $0x8] sm:$0xff] %vm348_vm1, %v1577_v28  ;;  %2446 = vmatmul.mubr.msk.f32.vlgmr.msra.gmra.mrb[4].mxu1 %vm70_vm0, %v1577_v28 }
0x17c8   :  { %1579 = vst.msk [vmem:[#allocation4 + $0x30] sm:$0xff] %vm350_vm2, %v1577_v28  ;;  %2745 = vmatpush1.bf16.msra.mxu1 %v3644_v14  ;;  %1759 = vmatprep.mubr.f32.mxu1 %v3096_v3 }
0x17c9   :  { %2747 = vmatprep.subr.bf16.mxu1 %v3646_v15 }
0x17cc   :  { %2749 = vmatpush1.bf16.msra.mxu1 %v3664_v22 }
0x17cd   :  { %2751 = vmatprep.subr.bf16.mxu1 %v3667_v23 }
0x17d0   :  { %2753 = vmatpush1.bf16.msra.mxu1 %v3685_v32 }
0x17d1   :  { %2755 = vmatprep.subr.bf16.mxu1 %v3688_v35 }
0x17d4   :  { %2757 = vmatpush1.bf16.msra.mxu1 %v3698_v40 }
0x17d5   :  { %2759 = vmatprep.subr.bf16.mxu1 %v3612_v13 }
0x189a   :  { %v1651_v29 = vpop.f32.mrb[4].mxu1 }
0x189b   :  { %v1653_v31 = vpop.f32.mrb[5].mxu1  ;;  %v2858_v36 = vadd.f32 %v1651_v29, %v3729_v50 }
0x189c   :  { %v2859_v33 = vadd.f32 %v1653_v31, %v3723_v42 }
0x189d   :  { %v2447_v41 = vmul.f32 -1.442695, %v2858_v36 }
0x189e   :  { %3024 = vtanh.f32 %v2859_v33  ;;  %v2448_v51 = vmul.f32 -1.442695, %v2859_v33 }
0x189f   :  { %3026 = vpow2.f32 %v2447_v41 }
0x18a8   :  { %v3025_v34 = vpop.eup %3024 }
0x18a9   :  { %1673 = vrot.lane.b32.xlu0 %v3025_v34, %s3097_s11  ;;  %v3027_v47 = vpop.eup %3026 }
0x18aa   :  { %v1664_v37 = vadd.f32 1.0, %v3027_v47 }
0x18ac   :  { %3028 = vrcp.f32 %v1664_v37 }
0x18b6   :  { %v3029_v48 = vpop.eup %3028 }
0x18b7   :  { %v1671_v43 = vmul.f32 %v3029_v48, %v1571_v18 }
0x191b   :  { %v1674_v52 = vpop.permute.xlu0 %1673 }
0x191c   :  { %v1676_v39 = vmul.f32 %v3029_v48, %v1674_v52 }
0x191e   :  { %1678 = vrot.lane.b32.xlu1 %v1676_v39, %s3097_s11 }
0x1990   :  { %v1679_v44 = vpop.permute.xlu1 %1678 }
0x1991   :  { %v1681_v45 = vadd.f32 %v1679_v44, %v1671_v43 }
0x1993   :  { %3030 = vtanh.f32 %v1681_v45 }
0x1994   :  { %3032 = vpow2.f32 %v2448_v51 }
0x199d   :  { %v3031_v46 = vpop.eup %3030 }
0x199e   :  { %1684 = vrot.lane.b32.xlu0 %v3031_v46, %s3097_s11  ;;  %v3033_v54 = vpop.eup %3032 }
0x199f   :  { %v1665_v55 = vadd.f32 1.0, %v3033_v54 }
0x19a1   :  { %3034 = vrcp.f32 %v1665_v55 }
0x19ab   :  { %v3035_v57 = vpop.eup %3034 }
0x1a10   :  { %v1685_v59 = vpop.permute.xlu0 %1684 }
0x1a11   :  { %v1687_v60 = vmul.f32 %v3035_v57, %v1685_v59 }
0x1a13   :  { %1688 = vst.msk [vmem:[#allocation4 + $0x10] sm:$0xff] %vm348_vm1, %v1687_v60  ;;  %2449 = vmatmul.mubr.msk.f32.vlgmr.msra.gmra.mrb[6].mxu1 %vm70_vm0, %v1687_v60 }
0x1a14   :  { %1689 = vst.msk [vmem:[#allocation4 + $0x28] sm:$0xff] %vm350_vm2, %v1687_v60  ;;  %2761 = vmatpush1.bf16.msra.mxu1 %v3644_v14  ;;  %1869 = vmatprep.mubr.f32.mxu1 %v3096_v3 }
0x1a15   :  { %2763 = vmatprep.subr.bf16.mxu1 %v3646_v15 }
0x1a18   :  { %2765 = vmatpush1.bf16.msra.mxu1 %v3664_v22 }
0x1a19   :  { %2767 = vmatprep.subr.bf16.mxu1 %v3667_v23 }
0x1a1c   :  { %2769 = vmatpush1.bf16.msra.mxu1 %v3685_v32 }
0x1a1d   :  { %2771 = vmatprep.subr.bf16.mxu1 %v3688_v35 }
0x1a20   :  { %2773 = vmatpush1.bf16.msra.mxu1 %v3698_v40 }
0x1a21   :  { %2775 = vmatprep.subr.bf16.mxu1 %v3612_v13 }
0x1ae6   :  { %v1761_v62 = vpop.f32.mrb[6].mxu1 }
0x1ae7   :  { %v1763_v56 = vpop.f32.mrb[7].mxu1  ;;  %v2860_v1 = vadd.f32 %v1761_v62, %v3729_v50 }
0x1ae8   :  { %v2861_v63 = vadd.f32 %v1763_v56, %v3723_v42 }
0x1ae9   :  { %v2450_v58 = vmul.f32 -1.442695, %v2860_v1 }
0x1aea   :  { %3036 = vtanh.f32 %v2861_v63  ;;  %v2451_v38 = vmul.f32 -1.442695, %v2861_v63 }
0x1aeb   :  { %3038 = vpow2.f32 %v2450_v58 }
0x1af4   :  { %v3037_v0 = vpop.eup %3036 }
0x1af5   :  { %1783 = vrot.lane.b32.xlu1 %v3037_v0, %s3097_s11  ;;  %v3039_v2 = vpop.eup %3038 }
0x1af6   :  { %v1774_v5 = vadd.f32 1.0, %v3039_v2 }
0x1af8   :  { %3040 = vrcp.f32 %v1774_v5 }
0x1b02   :  { %v3041_v6 = vpop.eup %3040 }
0x1b03   :  { %v1781_v8 = vmul.f32 %v3041_v6, %v1681_v45 }
0x1b67   :  { %v1784_v61 = vpop.permute.xlu1 %1783 }
0x1b68   :  { %v1786_v4 = vmul.f32 %v3041_v6, %v1784_v61 }
0x1b6a   :  { %1788 = vrot.lane.b32.xlu0 %v1786_v4, %s3097_s11 }
0x1bdc   :  { %v1789_v9 = vpop.permute.xlu0 %1788 }
0x1bdd   :  { %v1791_v21 = vadd.f32 %v1789_v9, %v1781_v8 }
0x1bdf   :  { %3042 = vtanh.f32 %v1791_v21 }
0x1be0   :  { %3044 = vpow2.f32 %v2451_v38 }
0x1be9   :  { %v3043_v49 = vpop.eup %3042 }
0x1bea   :  { %1794 = vrot.lane.b32.xlu1 %v3043_v49, %s3097_s11  ;;  %v3045_v10 = vpop.eup %3044 }
0x1beb   :  { %v1775_v11 = vadd.f32 1.0, %v3045_v10 }
0x1bed   :  { %3046 = vrcp.f32 %v1775_v11 }
0x1bf7   :  { %v3047_v12 = vpop.eup %3046 }
0x1c5c   :  { %v1795_v53 = vpop.permute.xlu1 %1794 }
0x1c5d   :  { %v1797_v30 = vmul.f32 %v3047_v12, %v1795_v53 }
0x1c5f   :  { %1798 = vst.msk [vmem:[#allocation4 + $0x18] sm:$0xff] %vm348_vm1, %v1797_v30  ;;  %2452 = vmatmul.mubr.msk.f32.vlgmr.msra.gmra.mrb[8].mxu1 %vm70_vm0, %v1797_v30 }
0x1c60   :  { %1799 = vst.msk [vmem:[#allocation4 + $0x20] sm:$0xff] %vm350_vm2, %v1797_v30  ;;  %2777 = vmatpush1.bf16.msra.mxu1 %v3644_v14  ;;  %1979 = vmatprep.mubr.f32.mxu1 %v3096_v3 }
0x1c61   :  { %2779 = vmatprep.subr.bf16.mxu1 %v3646_v15 }
0x1c64   :  { %2781 = vmatpush1.bf16.msra.mxu1 %v3664_v22 }
0x1c65   :  { %2783 = vmatprep.subr.bf16.mxu1 %v3667_v23 }
0x1c68   :  { %2785 = vmatpush1.bf16.msra.mxu1 %v3685_v32 }
0x1c69   :  { %2787 = vmatprep.subr.bf16.mxu1 %v3688_v35 }
0x1c6c   :  { %2789 = vmatpush1.bf16.msra.mxu1 %v3698_v40 }
0x1c6d   :  { %2791 = vmatprep.subr.bf16.mxu1 %v3612_v13 }
0x1d32   :  { %v1871_v7 = vpop.f32.mrb[8].mxu1 }
0x1d33   :  { %v1873_v16 = vpop.f32.mrb[9].mxu1  ;;  %v2862_v19 = vadd.f32 %v1871_v7, %v3729_v50 }
0x1d34   :  { %v2863_v17 = vadd.f32 %v1873_v16, %v3723_v42 }
0x1d35   :  { %v2453_v27 = vmul.f32 -1.442695, %v2862_v19 }
0x1d36   :  { %3048 = vtanh.f32 %v2863_v17  ;;  %v2454_v36 = vmul.f32 -1.442695, %v2863_v17 }
0x1d37   :  { %3050 = vpow2.f32 %v2453_v27 }
0x1d40   :  { %v3049_v18 = vpop.eup %3048 }
0x1d41   :  { %1893 = vrot.lane.b32.xlu0 %v3049_v18, %s3097_s11  ;;  %v3051_v20 = vpop.eup %3050 }
0x1d42   :  { %v1884_v24 = vadd.f32 1.0, %v3051_v20 }
0x1d44   :  { %3052 = vrcp.f32 %v1884_v24 }
0x1d4e   :  { %v3053_v25 = vpop.eup %3052 }
0x1d4f   :  { %v1891_v29 = vmul.f32 %v3053_v25, %v1791_v21 }
0x1db3   :  { %v1894_v26 = vpop.permute.xlu0 %1893 }
0x1db4   :  { %v1896_v28 = vmul.f32 %v3053_v25, %v1894_v26 }
0x1db6   :  { %1898 = vrot.lane.b32.xlu1 %v1896_v28, %s3097_s11 }
0x1e28   :  { %v1899_v31 = vpop.permute.xlu1 %1898 }
0x1e29   :  { %v1901_v33 = vadd.f32 %v1899_v31, %v1891_v29  ;;  %v2251_v31 = vld [vmem:[%s3924_s7 + $0x8] sm:$0xff] }
0x1e2b   :  { %3054 = vtanh.f32 %v1901_v33 }
0x1e2c   :  { %3056 = vpow2.f32 %v2454_v36 }
0x1e35   :  { %v3055_v34 = vpop.eup %3054 }
0x1e36   :  { %1904 = vrot.lane.b32.xlu0 %v3055_v34, %s3097_s11  ;;  %v3057_v41 = vpop.eup %3056  ;;  %v2253_v34 = vld [vmem:[%s3924_s7 + $0x18] sm:$0xff] }
0x1e37   :  { %v1885_v47 = vadd.f32 1.0, %v3057_v41 }
0x1e39   :  { %3058 = vrcp.f32 %v1885_v47 }
0x1e43   :  { %v3059_v37 = vpop.eup %3058 }
0x1ea8   :  { %v1905_v48 = vpop.permute.xlu0 %1904 }
0x1ea9   :  { %v1907_v52 = vmul.f32 %v3059_v37, %v1905_v48  ;;  %v2254_v48 = vld [vmem:[%s3924_s7 + $0x20] sm:$0xff] }
0x1eab   :  { %1908 = vst.msk [vmem:[#allocation4 + $0x20] sm:$0xff] %vm348_vm1, %v1907_v52  ;;  %2455 = vmatmul.mubr.msk.f32.vlgmr.msra.gmra.mrb[10].mxu1 %vm70_vm0, %v1907_v52 }
0x1eac   :  { %1909 = vst.msk [vmem:[#allocation4 + $0x18] sm:$0xff] %vm350_vm2, %v1907_v52  ;;  %2793 = vmatpush1.bf16.msra.mxu1 %v3644_v14  ;;  %2089 = vmatprep.mubr.f32.mxu1 %v3096_v3  ;;  %v2255_v52 = vld [vmem:[%s3924_s7 + $0x28] sm:$0xff] }
0x1ead   :  { %2795 = vmatprep.subr.bf16.mxu1 %v3646_v15 }
0x1eb0   :  { %2797 = vmatpush1.bf16.msra.mxu1 %v3664_v22 }
0x1eb1   :  { %2799 = vmatprep.subr.bf16.mxu1 %v3667_v23 }
0x1eb4   :  { %2801 = vmatpush1.bf16.msra.mxu1 %v3685_v32 }
0x1eb5   :  { %2803 = vmatprep.subr.bf16.mxu1 %v3688_v35 }
0x1eb8   :  { %2805 = vmatpush1.bf16.msra.mxu1 %v3698_v40 }
0x1eb9   :  { %2807 = vmatprep.subr.bf16.mxu1 %v3612_v13 }
0x1f7e   :  { %v1981_v39 = vpop.f32.mrb[10].mxu1 }
0x1f7f   :  { %v1983_v43 = vpop.f32.mrb[11].mxu1  ;;  %v2864_v46 = vadd.f32 %v1981_v39, %v3729_v50  ;;  %v2830_v39 = vpack.c.bf16 %v2255_v52, %v2254_v48 }
0x1f80   :  { %v2865_v44 = vadd.f32 %v1983_v43, %v3723_v42  ;;  %v2256_v43 = vld [vmem:[%s3924_s7 + $0x30] sm:$0xff] }
0x1f81   :  { %v2456_v51 = vmul.f32 -1.442695, %v2864_v46 }
0x1f82   :  { %3060 = vtanh.f32 %v2865_v44  ;;  %v2457_v0 = vmul.f32 -1.442695, %v2865_v44  ;;  %v2257_v44 = vld [vmem:[%s3924_s7 + $0x38] sm:$0xff] }
0x1f83   :  { %3062 = vpow2.f32 %v2456_v51 }
0x1f8c   :  { %v3061_v45 = vpop.eup %3060 }
0x1f8d   :  { %2003 = vrot.lane.b32.xlu1 %v3061_v45, %s3097_s11  ;;  %v3063_v54 = vpop.eup %3062  ;;  %v2834_v45 = vpack.c.bf16 %v2257_v44, %v2256_v43 }
0x1f8e   :  { %v1994_v55 = vadd.f32 1.0, %v3063_v54 }
0x1f90   :  { %3064 = vrcp.f32 %v1994_v55 }
0x1f9a   :  { %v3065_v57 = vpop.eup %3064 }
0x1f9b   :  { %v2001_v13 = vmul.f32 %v3065_v57, %v1901_v33 }
0x1fff   :  { %v2004_v59 = vpop.permute.xlu1 %2003 }
0x2000   :  { %v2006_v60 = vmul.f32 %v3065_v57, %v2004_v59 }
0x2002   :  { %2008 = vrot.lane.b32.xlu0 %v2006_v60, %s3097_s11 }
0x2074   :  { %v2009_v62 = vpop.permute.xlu0 %2008 }
0x2075   :  { %v2011_v56 = vadd.f32 %v2009_v62, %v2001_v13 }
0x2077   :  { %3066 = vtanh.f32 %v2011_v56 }
0x2078   :  { %3068 = vpow2.f32 %v2457_v0  ;;  %v2246_v0 = vld [vmem:[#allocation4 + $0x20] sm:$0xff] }
0x2081   :  { %v3067_v63 = vpop.eup %3066 }
0x2082   :  { %2014 = vrot.lane.b32.xlu1 %v3067_v63, %s3097_s11  ;;  %v3069_v1 = vpop.eup %3068  ;;  %v2245_v63 = vld [vmem:[#allocation4 + $0x18] sm:$0xff] }
0x2083   :  { %v1995_v58 = vadd.f32 1.0, %v3069_v1 }
0x2085   :  { %3070 = vrcp.f32 %v1995_v58 }
0x208f   :  { %v3071_v2 = vpop.eup %3070 }
0x20f4   :  { %v2015_v5 = vpop.permute.xlu1 %2014 }
0x20f5   :  { %v2017_v6 = vmul.f32 %v3071_v2, %v2015_v5  ;;  %v2465_v5 = vld [vmem:[%s3925_s8] ss:$0 sm:$0xff] }
0x20f7   :  { %2018 = vst.msk [vmem:[#allocation4 + $0x28] sm:$0xff] %vm348_vm1, %v2017_v6  ;;  %2458 = vmatmul.mubr.msk.f32.vlgmr.msra.gmra.mrb[12].mxu1 %vm70_vm0, %v2017_v6 }
0x20f8   :  { %2019 = vst.msk [vmem:[#allocation4 + $0x10] sm:$0xff] %vm350_vm2, %v2017_v6  ;;  %2809 = vmatpush1.bf16.msra.mxu1 %v3644_v14  ;;  %2199 = vmatprep.mubr.f32.mxu1 %v3096_v3 }
0x20f9   :  { %2811 = vmatprep.subr.bf16.mxu1 %v3646_v15 }
0x20fc   :  { %2813 = vmatpush1.bf16.msra.mxu1 %v3664_v22 }
0x20fd   :  { %2815 = vmatprep.subr.bf16.mxu1 %v3667_v23 }
0x20fe   :  { %v2247_v1 = vld [vmem:[#allocation4 + $0x28] sm:$0xff] }
0x2100   :  { %2817 = vmatpush1.bf16.msra.mxu1 %v3685_v32 }
0x2101   :  { %2819 = vmatprep.subr.bf16.mxu1 %v3688_v35 }
0x2104   :  { %2821 = vmatpush1.bf16.msra.mxu1 %v3698_v40 }
0x21ca   :  { %v2091_v61 = vpop.f32.mrb[12].mxu1 }
0x21cb   :  { %v2093_v4 = vpop.f32.mrb[13].mxu1  ;;  %v2866_v3 = vadd.f32 %v2091_v61, %v3729_v50 }
0x21cc   :  { %v2867_v8 = vadd.f32 %v2093_v4, %v3723_v42 }
0x21cd   :  { %v2459_v15 = vmul.f32 -1.442695, %v2866_v3 }
0x21ce   :  { %3072 = vtanh.f32 %v2867_v8  ;;  %v2460_v10 = vmul.f32 -1.442695, %v2867_v8 }
0x21cf   :  { %3074 = vpow2.f32 %v2459_v15 }
0x21d8   :  { %v3073_v14 = vpop.eup %3072 }
0x21d9   :  { %2113 = vrot.lane.b32.xlu0 %v3073_v14, %s3097_s11  ;;  %v3075_v22 = vpop.eup %3074 }
0x21da   :  { %v2104_v23 = vadd.f32 1.0, %v3075_v22 }
0x21dc   :  { %3076 = vrcp.f32 %v2104_v23 }
0x21e6   :  { %v3077_v32 = vpop.eup %3076 }
0x21e7   :  { %v2111_v40 = vmul.f32 %v3077_v32, %v2011_v56  ;;  %v2244_v56 = vld [vmem:[#allocation4 + $0x10] sm:$0xff] }
0x224b   :  { %v2114_v9 = vpop.permute.xlu0 %2113 }
0x224c   :  { %v2116_v35 = vmul.f32 %v3077_v32, %v2114_v9 }
0x224e   :  { %2118 = vrot.lane.b32.xlu1 %v2116_v35, %s3097_s11 }
0x22c0   :  { %v2119_v21 = vpop.permute.xlu1 %2118 }
0x22c1   :  { %v2121_v49 = vadd.f32 %v2119_v21, %v2111_v40 }
0x22c3   :  { %3078 = vtanh.f32 %v2121_v49 }
0x22c4   :  { %3080 = vpow2.f32 %v2460_v10 }
0x22cd   :  { %v3079_v38 = vpop.eup %3078 }
0x22ce   :  { %2124 = vrot.lane.b32.xlu0 %v3079_v38, %s3097_s11  ;;  %v3081_v11 = vpop.eup %3080 }
0x22cf   :  { %v2105_v12 = vadd.f32 1.0, %v3081_v11 }
0x22d1   :  { %3082 = vrcp.f32 %v2105_v12 }
0x22db   :  { %v3083_v53 = vpop.eup %3082 }
0x2340   :  { %v2125_v30 = vpop.permute.xlu0 %2124 }
0x2341   :  { %v2127_v7 = vmul.f32 %v3083_v53, %v2125_v30 }
0x2343   :  { %2128 = vst.msk [vmem:[#allocation4 + $0x30] sm:$0xff] %vm348_vm1, %v2127_v7  ;;  %2461 = vmatmul.mubr.msk.f32.vlgmr.msra.gmra.mrb[14].mxu1 %vm70_vm0, %v2127_v7 }
0x2344   :  { %2129 = vst.msk [vmem:[#allocation4 + $0x8] sm:$0xff] %vm350_vm2, %v2127_v7 }
0x234a   :  { %v2248_v58 = vld [vmem:[#allocation4 + $0x30] sm:$0xff] }
0x234b   :  { %v2243_v62 = vld [vmem:[#allocation4 + $0x8] sm:$0xff] }
0x2416   :  { %v2201_v16 = vpop.f32.mrb[14].mxu1 }
0x2417   :  { %v2203_v17 = vpop.f32.mrb[15].mxu1  ;;  %v2868_v27 = vadd.f32 %v2201_v16, %v3729_v50  ;;  %v2252_v50 = vld [vmem:[%s3924_s7 + $0x10] sm:$0xff] }
0x2418   :  { %v2869_v18 = vadd.f32 %v2203_v17, %v3723_v42  ;;  %v2250_v42 = vld [vmem:[%s3924_s7] sm:$0xff]  ;;  %v2826_v36 = vpack.c.bf16 %v2253_v34, %v2252_v50 }
0x2419   :  { %v2462_v20 = vmul.f32 -1.442695, %v2868_v27  ;;  %v2822_v33 = vpack.c.bf16 %v2251_v31, %v2250_v42 }
0x241a   :  { %3084 = vtanh.f32 %v2869_v18  ;;  %v2463_v51 = vmul.f32 -1.442695, %v2869_v18 }
0x241b   :  { %3086 = vpow2.f32 %v2462_v20  ;;  %2823 = vmatprep.subr.bf16.mxu0 %v2822_v33 }
0x241c   :  { %2825 = vmatpush3.bf16.msra.mxu0 %v2822_v33 }
0x241d   :  { %2827 = vmatprep.subr.bf16.mxu0 %v2826_v36 }
0x2420   :  { %2829 = vmatpush3.bf16.msra.mxu0 %v2826_v36 }
0x2421   :  { %2831 = vmatprep.subr.bf16.mxu0 %v2830_v39 }
0x2424   :  { %v3085_v19 = vpop.eup %3084  ;;  %2833 = vmatpush3.bf16.msra.mxu0 %v2830_v39 }
0x2425   :  { %2223 = vrot.lane.b32.xlu1 %v3085_v19, %s3097_s11  ;;  %v3087_v24 = vpop.eup %3086  ;;  %2835 = vmatprep.subr.bf16.mxu0 %v2834_v45 }
0x2426   :  { %v2214_v25 = vadd.f32 1.0, %v3087_v24 }
0x2428   :  { %3088 = vrcp.f32 %v2214_v25  ;;  %2837 = vmatpush3.bf16.msra.mxu0 %v2834_v45 }
0x2432   :  { %v3089_v26 = vpop.eup %3088 }
0x2433   :  { %v2221_v41 = vmul.f32 %v3089_v26, %v2121_v49 }
0x2497   :  { %v2224_v28 = vpop.permute.xlu1 %2223 }
0x2498   :  { %v2226_v29 = vmul.f32 %v3089_v26, %v2224_v28 }
0x249a   :  { %2228 = vrot.lane.b32.xlu0 %v2226_v29, %s3097_s11 }
0x250c   :  { %v2229_v47 = vpop.permute.xlu0 %2228 }
0x250d   :  { %v2231_v37 = vadd.f32 %v2229_v47, %v2221_v41 }
0x250f   :  { %3090 = vtanh.f32 %v2231_v37 }
0x2510   :  { %3092 = vpow2.f32 %v2463_v51 }
0x2519   :  { %v3091_v46 = vpop.eup %3090 }
0x251a   :  { %2234 = vrot.lane.b32.xlu1 %v3091_v46, %s3097_s11  ;;  %v3093_v54 = vpop.eup %3092 }
0x251b   :  { %v2215_v55 = vadd.f32 1.0, %v3093_v54 }
0x251d   :  { %3094 = vrcp.f32 %v2215_v55 }
0x2527   :  { %v3095_v57 = vpop.eup %3094 }
0x258c   :  { %v2235_v59 = vpop.permute.xlu1 %2234 }
0x258d   :  { %v2237_v60 = vmul.f32 %v3095_v57, %v2235_v59 }
0x258f   :  { %2238 = vst.msk [vmem:[#allocation4 + $0x38] sm:$0xff] %vm348_vm1, %v2237_v60 }
0x2590   :  { %2239 = vst.msk [vmem:[#allocation4] sm:$0xff] %vm350_vm2, %v2237_v60 }
0x2591   :  { %2464 = vst.msk [vmem:[%s3922_s10 + $0x8] sm:$0xff] %vm70_vm0, %v2237_v60 }
0x2596   :  { %v2249_v2 = vld [vmem:[#allocation4 + $0x38] sm:$0xff] }
0x2597   :  { %v2242_v13 = vld [vmem:[#allocation4] sm:$0xff] }
0x2598   :  { %2506 = vmatprep.mubr.msk.f32.mxu0 %vm70_vm0, %v2242_v13 }
0x2599   :  { %2507 = vmatmul.mubr.msk.f32.vlgmr.msra.gmra.mrb[16].mxu0 %vm70_vm0, %v2243_v62 }
0x259a   :  { %2509 = vmatprep.mubr.msk.f32.mxu0 %vm70_vm0, %v2244_v56 }
0x259d   :  { %2510 = vmatmul.mubr.msk.f32.gmra.mrb[18].mxu0 %vm70_vm0, %v2245_v63 }
0x259e   :  { %2512 = vmatprep.mubr.msk.f32.mxu0 %vm70_vm0, %v2246_v0 }
0x25a1   :  { %2513 = vmatmul.mubr.msk.f32.gmra.mrb[20].mxu0 %vm70_vm0, %v2247_v1 }
0x25a2   :  { %2515 = vmatprep.mubr.msk.f32.mxu0 %vm70_vm0, %v2248_v58 }
0x25a5   :  { %2516 = vmatmul.mubr.msk.f32.gmra.mrb[22].mxu0 %vm70_vm0, %v2249_v2 }
0x266c   :  { %v2508_v6 = vpop.f32.mrb[16].mxu0 }
0x266d   :  { %v2361_v61 = vadd.f32 %v2508_v6, %v2465_v5  ;;  %v2355_v4 = vpop.f32.mrb[17].mxu0 }
0x266e   :  { %v2356_v8 = vadd.f32 %v2465_v5, %v2355_v4 }
0x266f   :  { %2395 = vst.msk [vmem:[%s3926_s9 + $0x8] sm:$0xff] %vm348_vm1, %v2361_v61 }
0x2670   :  { %2394 = vst.msk [vmem:[%s3926_s9] sm:$0xff] %vm348_vm1, %v2356_v8  ;;  %v2511_v14 = vpop.f32.mrb[18].mxu0 }
0x2671   :  { %v2371_v3 = vadd.f32 %v2511_v14, %v2465_v5  ;;  %v2365_v15 = vpop.f32.mrb[19].mxu0 }
0x2672   :  { %v2366_v22 = vadd.f32 %v2465_v5, %v2365_v15 }
0x2673   :  { %2397 = vst.msk [vmem:[%s3926_s9 + $0x18] sm:$0xff] %vm348_vm1, %v2371_v3 }
0x2674   :  { %2396 = vst.msk [vmem:[%s3926_s9 + $0x10] sm:$0xff] %vm348_vm1, %v2366_v22  ;;  %v2514_v23 = vpop.f32.mrb[20].mxu0 }
0x2675   :  { %v2381_v32 = vadd.f32 %v2514_v23, %v2465_v5  ;;  %v2375_v9 = vpop.f32.mrb[21].mxu0 }
0x2676   :  { %v2376_v35 = vadd.f32 %v2465_v5, %v2375_v9 }
0x2677   :  { %2399 = vst.msk [vmem:[%s3926_s9 + $0x28] sm:$0xff] %vm348_vm1, %v2381_v32 }
0x2678   :  { %2398 = vst.msk [vmem:[%s3926_s9 + $0x20] sm:$0xff] %vm348_vm1, %v2376_v35  ;;  %v2517_v40 = vpop.f32.mrb[22].mxu0 }
0x2679   :  { %v2391_v21 = vadd.f32 %v2517_v40, %v2465_v5  ;;  %v2385_v49 = vpop.f32.mrb[23].mxu0 }
0x267a   :  { %v2386_v38 = vadd.f32 %v2465_v5, %v2385_v49 }
0x267b   :  { %2401 = vst.msk [vmem:[%s3926_s9 + $0x38] sm:$0xff] %vm348_vm1, %v2391_v21 }
0x267c   :  { %2400 = vst.msk [vmem:[%s3926_s9 + $0x30] sm:$0xff] %vm348_vm1, %v2386_v38 }

</bundles_post_ra>
